<compile_context>
chip_gen: v5e
topology: v5e:2x2
jax: 0.10.0
libtpu: 0.0.40
codegen_flags: <defaults>
</compile_context>

<pallas_src>
import math
from functools import partial

import numpy as np
import jax
import jax.numpy as jnp
from jax.experimental import pallas as pl
from jax.experimental.pallas import tpu as pltpu

_STRIDE = 2


# ---------------------------------------------------------------------------
# Host-side packing helpers (run ONCE per weight set, outside the jitted fwd).
# ---------------------------------------------------------------------------
def _same_pad_1d(n, k, s):
    out = -(-n // s)
    pad = max((out - 1) * s + k - n, 0)
    return out, pad // 2                       # TF SAME: extra pad bottom/right


def _phase_taps(k, s):
    """Sub-pixel decomposition of ConvTranspose2d(k, s) + TF-SAME crop.
    Output position r = s*q + phi pulls input x[q - d] weighted by kernel row
    p, for every (d, p) in per_phase[phi]."""
    pt = (k - s) // 2                          # rows cropped at top/left
    per_phase = []
    for phi in range(s):
        taps = []
        for d in range(-k, k + 1):
            p = s * d + phi + pt
            if 0 <= p < k:
                taps.append((d, p))
        per_phase.append(taps)
    ds = [d for taps in per_phase for d, _ in taps]
    return per_phase, min(ds), max(ds)


class _NaturalLayout:
    """(H, W) image stored as one row-major piece."""
    def __init__(self, h, w):
        self.H, self.W = h, w
        self.n_pieces, self.piece_size = 1, h * w

    def index(self, h, w):
        return h * self.W + w


class _PhaseLayout:
    """(H, W) image stored as s*s phase pieces (phase-major, each piece a
    row-major low-res plane) -- the deferred-interleave decoder layout."""
    def __init__(self, h, w, s):
        self.H, self.W, self.s = h, w, s
        self.Hl, self.Wl = h // s, w // s
        self.n_pieces, self.piece_size = s * s, self.Hl * self.Wl

    def index(self, h, w):
        p = (h % self.s) * self.s + (w % self.s)
        return p * self.piece_size + (h // self.s) * self.Wl + (w // self.s)


def _build_gather(layout, src_fn, n_taps, oh, ow):
    """0/1 gather operand: rows = stacked input pieces, cols = (tap, out pos).
    Out-of-range taps (zero padding) simply have no 1 -> contribute zero."""
    q = oh * ow
    g = np.zeros((layout.n_pieces * layout.piece_size, n_taps * q), np.float32)
    for t in range(n_taps):
        for a in range(oh):
            for b in range(ow):
                h, w = src_fn(t, a, b)
                if 0 <= h < layout.H and 0 <= w < layout.W:
                    g[layout.index(h, w), t * q + a * ow + b] = 1.0
    return g


def prepare_params(enc_params, dec_params, channels, kernels, in_hw):
    """One-time host pack: per layer (gather operand, tap-major weights, bias).
    Returns (arrays, metas, out_info); arrays feed the fused kernel."""
    s = _STRIDE
    layout = _NaturalLayout(*in_hw)
    arrays, metas = [], []

    # encoder: Conv2dSamePad(k, 2) -> Conv2d(ci, co, k, stride=2) -> ReLU
    for li, k in enumerate(kernels):
        ci, co = channels[li], channels[li + 1]
        oh, pt = _same_pad_1d(layout.H, k, s)
        ow, plft = _same_pad_1d(layout.W, k, s)
        t_cnt = k * k

        def src(t, a, b, k=k, pt=pt, plft=plft):
            return s * a + t // k - pt, s * b + t % k - plft

        g = _build_gather(layout, src, t_cnt, oh, ow)
        wt, bi = enc_params[li]                       # (co, ci, k, k), (co,)
        wp = np.asarray(wt, np.float32).transpose(0, 2, 3, 1).reshape(co, t_cnt * ci)
        bp = np.asarray(bi, np.float32).reshape(co, 1)
        arrays += [jnp.asarray(g), jnp.asarray(wp), jnp.asarray(bp)]
        metas.append(dict(n_in=layout.n_pieces, s_in=layout.piece_size,
                          n_taps=t_cnt, q=oh * ow, n_out=1, c_in=ci, c_out=co,
                          active=[list(range(t_cnt))]))
        layout = _NaturalLayout(oh, ow)

    # decoder: ConvTranspose2d(ci, co, k, stride=2) -> TF-SAME crop -> ReLU
    rch = list(reversed(channels))
    rk = list(reversed(kernels))
    hf = wf = None
    for li, k in enumerate(rk):
        ci, co = rch[li], rch[li + 1]
        per_phase, d_lo, d_hi = _phase_taps(k, s)
        shifts = [(dh, dw) for dh in range(d_lo, d_hi + 1)
                  for dw in range(d_lo, d_hi + 1)]
        t_cnt = len(shifts)
        hf, wf = layout.H, layout.W                    # this layer's working grid

        def src(t, a, b, shifts=shifts):
            dh, dw = shifts[t]
            return a - dh, b - dw

        g = _build_gather(layout, src, t_cnt, hf, wf)
        wt, bi = dec_params[li]                        # (ci, co, k, k), (co,)
        wnp = np.asarray(wt, np.float32)
        bnp = np.asarray(bi, np.float32)
        wp = np.zeros((s * s * co, t_cnt * ci), np.float32)
        bp = np.zeros((s * s * co, 1), np.float32)
        active = []
        for phh in range(s):
            for phw in range(s):
                o = phh * s + phw
                bp[o * co:(o + 1) * co, 0] = bnp
                acts = []
                for dh, ph in per_phase[phh]:
                    for dw, pw in per_phase[phw]:
                        t = shifts.index((dh, dw))
                        wp[o * co:(o + 1) * co, t * ci:(t + 1) * ci] = wnp[:, :, ph, pw].T
                        acts.append(t)
                active.append(acts)
        arrays += [jnp.asarray(g), jnp.asarray(wp), jnp.asarray(bp)]
        metas.append(dict(n_in=layout.n_pieces, s_in=layout.piece_size,
                          n_taps=t_cnt, q=hf * wf, n_out=s * s, c_in=ci, c_out=co,
                          active=active))
        layout = _PhaseLayout(s * hf, s * wf, s)

    out_info = (channels[0], hf, wf)                   # final phase-major grid
    return arrays, metas, out_info


# ---------------------------------------------------------------------------
# Fused Pallas kernel: whole encoder + decoder per batch sample (grid=(N,)).
# ---------------------------------------------------------------------------
def _make_fused_kernel(metas):
    n_layers = len(metas)

    def kernel(*refs):
        x_ref, out_ref = refs[0], refs[-1]
        pieces = [x_ref[0]]                            # (C0, H*W) of this sample
        for li, m in enumerate(metas):
            g_ref = refs[1 + 3 * li]
            w = refs[2 + 3 * li][...]
            b = refs[3 + 3 * li][...]
            q, s_in = m["q"], m["s_in"]
            ci, co = m["c_in"], m["c_out"]
            # Fused im2col: one matmul per input piece against the 0/1 gather
            # operand -> P[ci, (tap, out_pos)], all taps at once.
            p = None
            for i, ap in enumerate(pieces):
                gi = g_ref[i * s_in:(i + 1) * s_in, :]
                term = jnp.dot(ap, gi, preferred_element_type=jnp.float32)
                p = term if p is None else p + term
            # Conv + bias + ReLU (f32 accumulation).  Default MXU precision;
            # pass precision=lax.Precision.HIGHEST for bit-level parity.
            outs = []
            for o in range(m["n_out"]):
                acc = None
                for t in m["active"][o]:
                    w_t = w[o * co:(o + 1) * co, t * ci:(t + 1) * ci]
                    p_t = p[:, t * q:(t + 1) * q]
                    term = jnp.dot(w_t, p_t, preferred_element_type=jnp.float32)
                    acc = term if acc is None else acc + term
                if acc is None:
                    acc = jnp.zeros((co, q), jnp.float32)
                acc = acc + b[o * co:(o + 1) * co, :]
                outs.append(jnp.maximum(acc, 0.0))
            if li == n_layers - 1:
                for o, y in enumerate(outs):
                    out_ref[0, o * co:(o + 1) * co, :] = y.astype(out_ref.dtype)
            else:
                pieces = outs                          # stays in VMEM

    return kernel


def conv_ae_forward(x, arrays, *, metas, out_info):
    """x: NCHW.  Entire encoder + decoder runs in ONE pallas_call."""
    n, c, h, w = x.shape
    s = _STRIDE
    c0, hl, wl = out_info
    out_rows, q_last = s * s * c0, hl * wl
    x2 = x.reshape(n, c, h * w)

    in_specs = [pl.BlockSpec((1, c, h * w), lambda i: (i, 0, 0))]
    in_specs += [pl.BlockSpec(a.shape, lambda i: (0, 0)) for a in arrays]
    out_specs = pl.BlockSpec((1, out_rows, q_last), lambda i: (i, 0, 0))

    flops = 0
    for m in metas:
        flops += 2 * m["c_in"] * m["n_in"] * m["s_in"] * m["n_taps"] * m["q"]
        flops += 2 * m["c_out"] * m["c_in"] * m["q"] * sum(len(a) for a in m["active"])
    flops *= n
    bytes_accessed = 4 * (x.size + n * out_rows * q_last + sum(a.size for a in arrays))

    out = pl.pallas_call(
        _make_fused_kernel(metas),
        out_shape=jax.ShapeDtypeStruct((n, out_rows, q_last), x.dtype),
        grid_spec=pltpu.PrefetchScalarGridSpec(
            num_scalar_prefetch=0,
            grid=(n,),
            in_specs=in_specs,
            out_specs=out_specs),
        compiler_params=pltpu.CompilerParams(
            dimension_semantics=("parallel",)),
        cost_estimate=pl.CostEstimate(flops=flops, transcendentals=0,
                                      bytes_accessed=bytes_accessed),
    )(x2, *arrays)

    # Single boundary relayout: phase-major kernel output -> NCHW.
    y = out.reshape(n, s, s, c0, hl, wl)
    y = jnp.transpose(y, (0, 3, 4, 1, 5, 2)).reshape(n, c0, s * hl, s * wl)
    return y


# ---------------------------------------------------------------------------
# Parameters (deterministic init, PyTorch-like uniform bounds)
# ---------------------------------------------------------------------------
def init_params(key, channels, kernels):
    enc = []
    for i in range(1, len(channels)):
        key, k1, k2 = jax.random.split(key, 3)
        ci, co, k = channels[i - 1], channels[i], kernels[i - 1]
        bound = 1.0 / math.sqrt(ci * k * k)
        w = jax.random.uniform(k1, (co, ci, k, k), jnp.float32, -bound, bound)
        b = jax.random.uniform(k2, (co,), jnp.float32, -bound, bound)
        enc.append((w, b))
    rch = list(reversed(channels))
    rk = list(reversed(kernels))
    dec = []
    for i in range(len(rch) - 1):
        key, k1, k2 = jax.random.split(key, 3)
        ci, co, k = rch[i], rch[i + 1], rk[i]
        bound = 1.0 / math.sqrt(ci * k * k)
        w = jax.random.uniform(k1, (ci, co, k, k), jnp.float32, -bound, bound)
        b = jax.random.uniform(k2, (co,), jnp.float32, -bound, bound)
        dec.append((w, b))
    return enc, dec


# ---------------------------------------------------------------------------
# Pure numpy reference (direct mirror of the PyTorch module) for a self-check.
# ---------------------------------------------------------------------------
def _ref_forward(x, enc_params, dec_params, kernels):
    s = _STRIDE
    h = np.asarray(x, np.float64)
    for (w, b), k in zip(enc_params, kernels):
        w = np.asarray(w, np.float64); b = np.asarray(b, np.float64)
        n, ci, hh, ww = h.shape
        oh, ow = -(-hh // s), -(-ww // s)
        ph = max((oh - 1) * s + k - hh, 0); pw = max((ow - 1) * s + k - ww, 0)
        pt, plft = ph // 2, pw // 2
        hp = np.zeros((n, ci, hh + ph, ww + pw), np.float64)
        hp[:, :, pt:pt + hh, plft:plft + ww] = h
        co = w.shape[0]
        out = np.zeros((n, co, oh, ow), np.float64)
        for a in range(oh):
            for c in range(ow):
                patch = hp[:, :, s * a:s * a + k, s * c:s * c + k]
                out[:, :, a, c] = np.tensordot(patch, w, ([1, 2, 3], [1, 2, 3]))
        out += b.reshape(1, co, 1, 1)
        h = np.maximum(out, 0.0)
    for (w, b), k in zip(dec_params, list(reversed(kernels))):
        w = np.asarray(w, np.float64); b = np.asarray(b, np.float64)
        n, ci, hh, ww = h.shape
        co = w.shape[1]
        hn, wn = (hh - 1) * s + k, (ww - 1) * s + k
        out = np.zeros((n, co, hn, wn), np.float64)
        for a in range(hh):
            for c in range(ww):
                out[:, :, s * a:s * a + k, s * c:s * c + k] += np.einsum(
                    'nc,cokl->nokl', h[:, :, a, c], w)
        out += b.reshape(1, co, 1, 1)
        pad = k - s
        pt = pad // 2
        out = out[:, :, pt:hn - (pad - pt), pt:wn - (pad - pt)]
        h = np.maximum(out, 0.0)
    return h


if __name__ == "__main__":
    channels = [4, 8, 16]      # input channels = 4
    kernels = [3, 3]
    key = jax.random.PRNGKey(0)
    key, xk = jax.random.split(key)
    x = jax.random.normal(xk, (2, 4, 16, 16), jnp.float32)   # NCHW
    enc_params, dec_params = init_params(key, channels, kernels)

    # One-time host-side pack (hoisted out of the traced forward).
    arrays, metas, out_info = prepare_params(enc_params, dec_params,
                                             channels, kernels, (16, 16))

    fwd = jax.jit(partial(conv_ae_forward, metas=metas, out_info=out_info))
    y = fwd(x, arrays)
    jax.block_until_ready(y)
    assert y.shape == x.shape, (y.shape, x.shape)

    ref = _ref_forward(np.asarray(x), enc_params, dec_params, kernels)
    err = float(np.max(np.abs(np.asarray(y, np.float64) - ref)))
    assert np.allclose(np.asarray(y), ref, rtol=2e-2, atol=2e-2), err
    print("KERNEL_OK")
</pallas_src>

<mosaic_0001>
module attributes {stable_mosaic.version = 11 : i64} {
  func.func @kernel(%arg0: i32, %arg1: memref<1x4x256xf32, #tpu.memory_space<vmem>>, %arg2: memref<256x576xf32, #tpu.memory_space<vmem>>, %arg3: memref<8x36xf32, #tpu.memory_space<vmem>>, %arg4: memref<8x1xf32, #tpu.memory_space<vmem>>, %arg5: memref<64x144xf32, #tpu.memory_space<vmem>>, %arg6: memref<16x72xf32, #tpu.memory_space<vmem>>, %arg7: memref<16x1xf32, #tpu.memory_space<vmem>>, %arg8: memref<16x64xf32, #tpu.memory_space<vmem>>, %arg9: memref<32x64xf32, #tpu.memory_space<vmem>>, %arg10: memref<32x1xf32, #tpu.memory_space<vmem>>, %arg11: memref<64x256xf32, #tpu.memory_space<vmem>>, %arg12: memref<16x32xf32, #tpu.memory_space<vmem>>, %arg13: memref<16x1xf32, #tpu.memory_space<vmem>>, %arg14: memref<1x16x64xf32, #tpu.memory_space<vmem>>) attributes {dimension_semantics = [#tpu.dimension_semantics<parallel>], iteration_bounds = array<i64: 2>, scalar_prefetch = 0 : i64, scratch_operands = 0 : i64, tpu.core_type = #tpu.core_type<tc>, window_params = [{transform_indices = @transform_0, window_bounds = array<i64: 1, 4, 256>}, {pipeline_mode = #tpu.pipeline_mode<synchronous>, transform_indices = @transform_1, window_bounds = array<i64: 256, 576>}, {pipeline_mode = #tpu.pipeline_mode<synchronous>, transform_indices = @transform_2, window_bounds = array<i64: 8, 36>}, {pipeline_mode = #tpu.pipeline_mode<synchronous>, transform_indices = @transform_3, window_bounds = array<i64: 8, 1>}, {pipeline_mode = #tpu.pipeline_mode<synchronous>, transform_indices = @transform_4, window_bounds = array<i64: 64, 144>}, {pipeline_mode = #tpu.pipeline_mode<synchronous>, transform_indices = @transform_5, window_bounds = array<i64: 16, 72>}, {pipeline_mode = #tpu.pipeline_mode<synchronous>, transform_indices = @transform_6, window_bounds = array<i64: 16, 1>}, {pipeline_mode = #tpu.pipeline_mode<synchronous>, transform_indices = @transform_7, window_bounds = array<i64: 16, 64>}, {pipeline_mode = #tpu.pipeline_mode<synchronous>, transform_indices = @transform_8, window_bounds = array<i64: 32, 64>}, {pipeline_mode = #tpu.pipeline_mode<synchronous>, transform_indices = @transform_9, window_bounds = array<i64: 32, 1>}, {pipeline_mode = #tpu.pipeline_mode<synchronous>, transform_indices = @transform_10, window_bounds = array<i64: 64, 256>}, {pipeline_mode = #tpu.pipeline_mode<synchronous>, transform_indices = @transform_11, window_bounds = array<i64: 16, 32>}, {pipeline_mode = #tpu.pipeline_mode<synchronous>, transform_indices = @transform_12, window_bounds = array<i64: 16, 1>}, {transform_indices = @transform_13, window_bounds = array<i64: 1, 16, 64>}]} {
    %c0 = arith.constant 0 : index
    %c0_0 = arith.constant 0 : index
    %c0_1 = arith.constant 0 : index
    %0 = vector.load %arg1[%c0, %c0_0, %c0_1] : memref<1x4x256xf32, #tpu.memory_space<vmem>>, vector<1x4x256xf32>
    %1 = vector.shape_cast %0 : vector<1x4x256xf32> to vector<4x256xf32>
    %c0_2 = arith.constant 0 : index
    %c0_3 = arith.constant 0 : index
    %2 = vector.load %arg3[%c0_2, %c0_3] : memref<8x36xf32, #tpu.memory_space<vmem>>, vector<8x36xf32>
    %c0_4 = arith.constant 0 : index
    %c0_5 = arith.constant 0 : index
    %3 = vector.load %arg4[%c0_4, %c0_5] : memref<8x1xf32, #tpu.memory_space<vmem>>, vector<8x1xf32>
    %c0_6 = arith.constant 0 : index
    %c0_7 = arith.constant 0 : index
    %4 = vector.load %arg2[%c0_6, %c0_7] : memref<256x576xf32, #tpu.memory_space<vmem>>, vector<256x576xf32>
    %cst = arith.constant dense<0.000000e+00> : vector<4x576xf32>
    %5 = tpu.matmul %1, %4, %cst {dimension_numbers = #tpu.dot_dimension_numbers<[1], [0], [0], [1], [0, 0, 1, 1], [], []>} : vector<4x256xf32>, vector<256x576xf32>, vector<4x576xf32> -> vector<4x576xf32>
    %6 = vector.extract_strided_slice %2 {offsets = [0, 0], sizes = [8, 4], strides = [1, 1]} : vector<8x36xf32> to vector<8x4xf32>
    %7 = vector.extract_strided_slice %5 {offsets = [0, 0], sizes = [4, 64], strides = [1, 1]} : vector<4x576xf32> to vector<4x64xf32>
    %cst_8 = arith.constant dense<0.000000e+00> : vector<8x64xf32>
    %8 = tpu.matmul %6, %7, %cst_8 {dimension_numbers = #tpu.dot_dimension_numbers<[1], [0], [0], [1], [0, 0, 1, 1], [], []>} : vector<8x4xf32>, vector<4x64xf32>, vector<8x64xf32> -> vector<8x64xf32>
    %9 = vector.extract_strided_slice %2 {offsets = [0, 4], sizes = [8, 4], strides = [1, 1]} : vector<8x36xf32> to vector<8x4xf32>
    %10 = vector.extract_strided_slice %5 {offsets = [0, 64], sizes = [4, 64], strides = [1, 1]} : vector<4x576xf32> to vector<4x64xf32>
    %cst_9 = arith.constant dense<0.000000e+00> : vector<8x64xf32>
    %11 = tpu.matmul %9, %10, %cst_9 {dimension_numbers = #tpu.dot_dimension_numbers<[1], [0], [0], [1], [0, 0, 1, 1], [], []>} : vector<8x4xf32>, vector<4x64xf32>, vector<8x64xf32> -> vector<8x64xf32>
    %12 = arith.addf %8, %11 : vector<8x64xf32>
    %13 = vector.extract_strided_slice %2 {offsets = [0, 8], sizes = [8, 4], strides = [1, 1]} : vector<8x36xf32> to vector<8x4xf32>
    %14 = vector.extract_strided_slice %5 {offsets = [0, 128], sizes = [4, 64], strides = [1, 1]} : vector<4x576xf32> to vector<4x64xf32>
    %cst_10 = arith.constant dense<0.000000e+00> : vector<8x64xf32>
    %15 = tpu.matmul %13, %14, %cst_10 {dimension_numbers = #tpu.dot_dimension_numbers<[1], [0], [0], [1], [0, 0, 1, 1], [], []>} : vector<8x4xf32>, vector<4x64xf32>, vector<8x64xf32> -> vector<8x64xf32>
    %16 = arith.addf %12, %15 : vector<8x64xf32>
    %17 = vector.extract_strided_slice %2 {offsets = [0, 12], sizes = [8, 4], strides = [1, 1]} : vector<8x36xf32> to vector<8x4xf32>
    %18 = vector.extract_strided_slice %5 {offsets = [0, 192], sizes = [4, 64], strides = [1, 1]} : vector<4x576xf32> to vector<4x64xf32>
    %cst_11 = arith.constant dense<0.000000e+00> : vector<8x64xf32>
    %19 = tpu.matmul %17, %18, %cst_11 {dimension_numbers = #tpu.dot_dimension_numbers<[1], [0], [0], [1], [0, 0, 1, 1], [], []>} : vector<8x4xf32>, vector<4x64xf32>, vector<8x64xf32> -> vector<8x64xf32>
    %20 = arith.addf %16, %19 : vector<8x64xf32>
    %21 = vector.extract_strided_slice %2 {offsets = [0, 16], sizes = [8, 4], strides = [1, 1]} : vector<8x36xf32> to vector<8x4xf32>
    %22 = vector.extract_strided_slice %5 {offsets = [0, 256], sizes = [4, 64], strides = [1, 1]} : vector<4x576xf32> to vector<4x64xf32>
    %cst_12 = arith.constant dense<0.000000e+00> : vector<8x64xf32>
    %23 = tpu.matmul %21, %22, %cst_12 {dimension_numbers = #tpu.dot_dimension_numbers<[1], [0], [0], [1], [0, 0, 1, 1], [], []>} : vector<8x4xf32>, vector<4x64xf32>, vector<8x64xf32> -> vector<8x64xf32>
    %24 = arith.addf %20, %23 : vector<8x64xf32>
    %25 = vector.extract_strided_slice %2 {offsets = [0, 20], sizes = [8, 4], strides = [1, 1]} : vector<8x36xf32> to vector<8x4xf32>
    %26 = vector.extract_strided_slice %5 {offsets = [0, 320], sizes = [4, 64], strides = [1, 1]} : vector<4x576xf32> to vector<4x64xf32>
    %cst_13 = arith.constant dense<0.000000e+00> : vector<8x64xf32>
    %27 = tpu.matmul %25, %26, %cst_13 {dimension_numbers = #tpu.dot_dimension_numbers<[1], [0], [0], [1], [0, 0, 1, 1], [], []>} : vector<8x4xf32>, vector<4x64xf32>, vector<8x64xf32> -> vector<8x64xf32>
    %28 = arith.addf %24, %27 : vector<8x64xf32>
    %29 = vector.extract_strided_slice %2 {offsets = [0, 24], sizes = [8, 4], strides = [1, 1]} : vector<8x36xf32> to vector<8x4xf32>
    %30 = vector.extract_strided_slice %5 {offsets = [0, 384], sizes = [4, 64], strides = [1, 1]} : vector<4x576xf32> to vector<4x64xf32>
    %cst_14 = arith.constant dense<0.000000e+00> : vector<8x64xf32>
    %31 = tpu.matmul %29, %30, %cst_14 {dimension_numbers = #tpu.dot_dimension_numbers<[1], [0], [0], [1], [0, 0, 1, 1], [], []>} : vector<8x4xf32>, vector<4x64xf32>, vector<8x64xf32> -> vector<8x64xf32>
    %32 = arith.addf %28, %31 : vector<8x64xf32>
    %33 = vector.extract_strided_slice %2 {offsets = [0, 28], sizes = [8, 4], strides = [1, 1]} : vector<8x36xf32> to vector<8x4xf32>
    %34 = vector.extract_strided_slice %5 {offsets = [0, 448], sizes = [4, 64], strides = [1, 1]} : vector<4x576xf32> to vector<4x64xf32>
    %cst_15 = arith.constant dense<0.000000e+00> : vector<8x64xf32>
    %35 = tpu.matmul %33, %34, %cst_15 {dimension_numbers = #tpu.dot_dimension_numbers<[1], [0], [0], [1], [0, 0, 1, 1], [], []>} : vector<8x4xf32>, vector<4x64xf32>, vector<8x64xf32> -> vector<8x64xf32>
    %36 = arith.addf %32, %35 : vector<8x64xf32>
    %37 = vector.extract_strided_slice %2 {offsets = [0, 32], sizes = [8, 4], strides = [1, 1]} : vector<8x36xf32> to vector<8x4xf32>
    %38 = vector.extract_strided_slice %5 {offsets = [0, 512], sizes = [4, 64], strides = [1, 1]} : vector<4x576xf32> to vector<4x64xf32>
    %cst_16 = arith.constant dense<0.000000e+00> : vector<8x64xf32>
    %39 = tpu.matmul %37, %38, %cst_16 {dimension_numbers = #tpu.dot_dimension_numbers<[1], [0], [0], [1], [0, 0, 1, 1], [], []>} : vector<8x4xf32>, vector<4x64xf32>, vector<8x64xf32> -> vector<8x64xf32>
    %40 = arith.addf %36, %39 : vector<8x64xf32>
    %41 = vector.broadcast %3 : vector<8x1xf32> to vector<8x64xf32>
    %42 = arith.addf %40, %41 : vector<8x64xf32>
    %cst_17 = arith.constant 0.000000e+00 : f32
    %43 = vector.broadcast %cst_17 : f32 to vector<8x64xf32>
    %44 = arith.maximumf %42, %43 : vector<8x64xf32>
    %c0_18 = arith.constant 0 : index
    %c0_19 = arith.constant 0 : index
    %45 = vector.load %arg6[%c0_18, %c0_19] : memref<16x72xf32, #tpu.memory_space<vmem>>, vector<16x72xf32>
    %c0_20 = arith.constant 0 : index
    %c0_21 = arith.constant 0 : index
    %46 = vector.load %arg7[%c0_20, %c0_21] : memref<16x1xf32, #tpu.memory_space<vmem>>, vector<16x1xf32>
    %c0_22 = arith.constant 0 : index
    %c0_23 = arith.constant 0 : index
    %47 = vector.load %arg5[%c0_22, %c0_23] : memref<64x144xf32, #tpu.memory_space<vmem>>, vector<64x144xf32>
    %cst_24 = arith.constant dense<0.000000e+00> : vector<8x144xf32>
    %48 = tpu.matmul %44, %47, %cst_24 {dimension_numbers = #tpu.dot_dimension_numbers<[1], [0], [0], [1], [0, 0, 1, 1], [], []>} : vector<8x64xf32>, vector<64x144xf32>, vector<8x144xf32> -> vector<8x144xf32>
    %49 = vector.extract_strided_slice %45 {offsets = [0, 0], sizes = [16, 8], strides = [1, 1]} : vector<16x72xf32> to vector<16x8xf32>
    %50 = vector.extract_strided_slice %48 {offsets = [0, 0], sizes = [8, 16], strides = [1, 1]} : vector<8x144xf32> to vector<8x16xf32>
    %cst_25 = arith.constant dense<0.000000e+00> : vector<16x16xf32>
    %51 = tpu.matmul %49, %50, %cst_25 {dimension_numbers = #tpu.dot_dimension_numbers<[1], [0], [0], [1], [0, 0, 1, 1], [], []>} : vector<16x8xf32>, vector<8x16xf32>, vector<16x16xf32> -> vector<16x16xf32>
    %52 = vector.extract_strided_slice %45 {offsets = [0, 8], sizes = [16, 8], strides = [1, 1]} : vector<16x72xf32> to vector<16x8xf32>
    %53 = vector.extract_strided_slice %48 {offsets = [0, 16], sizes = [8, 16], strides = [1, 1]} : vector<8x144xf32> to vector<8x16xf32>
    %cst_26 = arith.constant dense<0.000000e+00> : vector<16x16xf32>
    %54 = tpu.matmul %52, %53, %cst_26 {dimension_numbers = #tpu.dot_dimension_numbers<[1], [0], [0], [1], [0, 0, 1, 1], [], []>} : vector<16x8xf32>, vector<8x16xf32>, vector<16x16xf32> -> vector<16x16xf32>
    %55 = arith.addf %51, %54 : vector<16x16xf32>
    %56 = vector.extract_strided_slice %45 {offsets = [0, 16], sizes = [16, 8], strides = [1, 1]} : vector<16x72xf32> to vector<16x8xf32>
    %57 = vector.extract_strided_slice %48 {offsets = [0, 32], sizes = [8, 16], strides = [1, 1]} : vector<8x144xf32> to vector<8x16xf32>
    %cst_27 = arith.constant dense<0.000000e+00> : vector<16x16xf32>
    %58 = tpu.matmul %56, %57, %cst_27 {dimension_numbers = #tpu.dot_dimension_numbers<[1], [0], [0], [1], [0, 0, 1, 1], [], []>} : vector<16x8xf32>, vector<8x16xf32>, vector<16x16xf32> -> vector<16x16xf32>
    %59 = arith.addf %55, %58 : vector<16x16xf32>
    %60 = vector.extract_strided_slice %45 {offsets = [0, 24], sizes = [16, 8], strides = [1, 1]} : vector<16x72xf32> to vector<16x8xf32>
    %61 = vector.extract_strided_slice %48 {offsets = [0, 48], sizes = [8, 16], strides = [1, 1]} : vector<8x144xf32> to vector<8x16xf32>
    %cst_28 = arith.constant dense<0.000000e+00> : vector<16x16xf32>
    %62 = tpu.matmul %60, %61, %cst_28 {dimension_numbers = #tpu.dot_dimension_numbers<[1], [0], [0], [1], [0, 0, 1, 1], [], []>} : vector<16x8xf32>, vector<8x16xf32>, vector<16x16xf32> -> vector<16x16xf32>
    %63 = arith.addf %59, %62 : vector<16x16xf32>
    %64 = vector.extract_strided_slice %45 {offsets = [0, 32], sizes = [16, 8], strides = [1, 1]} : vector<16x72xf32> to vector<16x8xf32>
    %65 = vector.extract_strided_slice %48 {offsets = [0, 64], sizes = [8, 16], strides = [1, 1]} : vector<8x144xf32> to vector<8x16xf32>
    %cst_29 = arith.constant dense<0.000000e+00> : vector<16x16xf32>
    %66 = tpu.matmul %64, %65, %cst_29 {dimension_numbers = #tpu.dot_dimension_numbers<[1], [0], [0], [1], [0, 0, 1, 1], [], []>} : vector<16x8xf32>, vector<8x16xf32>, vector<16x16xf32> -> vector<16x16xf32>
    %67 = arith.addf %63, %66 : vector<16x16xf32>
    %68 = vector.extract_strided_slice %45 {offsets = [0, 40], sizes = [16, 8], strides = [1, 1]} : vector<16x72xf32> to vector<16x8xf32>
    %69 = vector.extract_strided_slice %48 {offsets = [0, 80], sizes = [8, 16], strides = [1, 1]} : vector<8x144xf32> to vector<8x16xf32>
    %cst_30 = arith.constant dense<0.000000e+00> : vector<16x16xf32>
    %70 = tpu.matmul %68, %69, %cst_30 {dimension_numbers = #tpu.dot_dimension_numbers<[1], [0], [0], [1], [0, 0, 1, 1], [], []>} : vector<16x8xf32>, vector<8x16xf32>, vector<16x16xf32> -> vector<16x16xf32>
    %71 = arith.addf %67, %70 : vector<16x16xf32>
    %72 = vector.extract_strided_slice %45 {offsets = [0, 48], sizes = [16, 8], strides = [1, 1]} : vector<16x72xf32> to vector<16x8xf32>
    %73 = vector.extract_strided_slice %48 {offsets = [0, 96], sizes = [8, 16], strides = [1, 1]} : vector<8x144xf32> to vector<8x16xf32>
    %cst_31 = arith.constant dense<0.000000e+00> : vector<16x16xf32>
    %74 = tpu.matmul %72, %73, %cst_31 {dimension_numbers = #tpu.dot_dimension_numbers<[1], [0], [0], [1], [0, 0, 1, 1], [], []>} : vector<16x8xf32>, vector<8x16xf32>, vector<16x16xf32> -> vector<16x16xf32>
    %75 = arith.addf %71, %74 : vector<16x16xf32>
    %76 = vector.extract_strided_slice %45 {offsets = [0, 56], sizes = [16, 8], strides = [1, 1]} : vector<16x72xf32> to vector<16x8xf32>
    %77 = vector.extract_strided_slice %48 {offsets = [0, 112], sizes = [8, 16], strides = [1, 1]} : vector<8x144xf32> to vector<8x16xf32>
    %cst_32 = arith.constant dense<0.000000e+00> : vector<16x16xf32>
    %78 = tpu.matmul %76, %77, %cst_32 {dimension_numbers = #tpu.dot_dimension_numbers<[1], [0], [0], [1], [0, 0, 1, 1], [], []>} : vector<16x8xf32>, vector<8x16xf32>, vector<16x16xf32> -> vector<16x16xf32>
    %79 = arith.addf %75, %78 : vector<16x16xf32>
    %80 = vector.extract_strided_slice %45 {offsets = [0, 64], sizes = [16, 8], strides = [1, 1]} : vector<16x72xf32> to vector<16x8xf32>
    %81 = vector.extract_strided_slice %48 {offsets = [0, 128], sizes = [8, 16], strides = [1, 1]} : vector<8x144xf32> to vector<8x16xf32>
    %cst_33 = arith.constant dense<0.000000e+00> : vector<16x16xf32>
    %82 = tpu.matmul %80, %81, %cst_33 {dimension_numbers = #tpu.dot_dimension_numbers<[1], [0], [0], [1], [0, 0, 1, 1], [], []>} : vector<16x8xf32>, vector<8x16xf32>, vector<16x16xf32> -> vector<16x16xf32>
    %83 = arith.addf %79, %82 : vector<16x16xf32>
    %84 = vector.broadcast %46 : vector<16x1xf32> to vector<16x16xf32>
    %85 = arith.addf %83, %84 : vector<16x16xf32>
    %cst_34 = arith.constant 0.000000e+00 : f32
    %86 = vector.broadcast %cst_34 : f32 to vector<16x16xf32>
    %87 = arith.maximumf %85, %86 : vector<16x16xf32>
    %c0_35 = arith.constant 0 : index
    %c0_36 = arith.constant 0 : index
    %88 = vector.load %arg9[%c0_35, %c0_36] : memref<32x64xf32, #tpu.memory_space<vmem>>, vector<32x64xf32>
    %c0_37 = arith.constant 0 : index
    %c0_38 = arith.constant 0 : index
    %89 = vector.load %arg10[%c0_37, %c0_38] : memref<32x1xf32, #tpu.memory_space<vmem>>, vector<32x1xf32>
    %c0_39 = arith.constant 0 : index
    %c0_40 = arith.constant 0 : index
    %90 = vector.load %arg8[%c0_39, %c0_40] : memref<16x64xf32, #tpu.memory_space<vmem>>, vector<16x64xf32>
    %cst_41 = arith.constant dense<0.000000e+00> : vector<16x64xf32>
    %91 = tpu.matmul %87, %90, %cst_41 {dimension_numbers = #tpu.dot_dimension_numbers<[1], [0], [0], [1], [0, 0, 1, 1], [], []>} : vector<16x16xf32>, vector<16x64xf32>, vector<16x64xf32> -> vector<16x64xf32>
    %92 = vector.extract_strided_slice %88 {offsets = [0, 0], sizes = [8, 16], strides = [1, 1]} : vector<32x64xf32> to vector<8x16xf32>
    %93 = vector.extract_strided_slice %91 {offsets = [0, 0], sizes = [16, 16], strides = [1, 1]} : vector<16x64xf32> to vector<16x16xf32>
    %cst_42 = arith.constant dense<0.000000e+00> : vector<8x16xf32>
    %94 = tpu.matmul %92, %93, %cst_42 {dimension_numbers = #tpu.dot_dimension_numbers<[1], [0], [0], [1], [0, 0, 1, 1], [], []>} : vector<8x16xf32>, vector<16x16xf32>, vector<8x16xf32> -> vector<8x16xf32>
    %95 = vector.extract_strided_slice %88 {offsets = [0, 16], sizes = [8, 16], strides = [1, 1]} : vector<32x64xf32> to vector<8x16xf32>
    %96 = vector.extract_strided_slice %91 {offsets = [0, 16], sizes = [16, 16], strides = [1, 1]} : vector<16x64xf32> to vector<16x16xf32>
    %cst_43 = arith.constant dense<0.000000e+00> : vector<8x16xf32>
    %97 = tpu.matmul %95, %96, %cst_43 {dimension_numbers = #tpu.dot_dimension_numbers<[1], [0], [0], [1], [0, 0, 1, 1], [], []>} : vector<8x16xf32>, vector<16x16xf32>, vector<8x16xf32> -> vector<8x16xf32>
    %98 = arith.addf %94, %97 : vector<8x16xf32>
    %99 = vector.extract_strided_slice %88 {offsets = [0, 32], sizes = [8, 16], strides = [1, 1]} : vector<32x64xf32> to vector<8x16xf32>
    %100 = vector.extract_strided_slice %91 {offsets = [0, 32], sizes = [16, 16], strides = [1, 1]} : vector<16x64xf32> to vector<16x16xf32>
    %cst_44 = arith.constant dense<0.000000e+00> : vector<8x16xf32>
    %101 = tpu.matmul %99, %100, %cst_44 {dimension_numbers = #tpu.dot_dimension_numbers<[1], [0], [0], [1], [0, 0, 1, 1], [], []>} : vector<8x16xf32>, vector<16x16xf32>, vector<8x16xf32> -> vector<8x16xf32>
    %102 = arith.addf %98, %101 : vector<8x16xf32>
    %103 = vector.extract_strided_slice %88 {offsets = [0, 48], sizes = [8, 16], strides = [1, 1]} : vector<32x64xf32> to vector<8x16xf32>
    %104 = vector.extract_strided_slice %91 {offsets = [0, 48], sizes = [16, 16], strides = [1, 1]} : vector<16x64xf32> to vector<16x16xf32>
    %cst_45 = arith.constant dense<0.000000e+00> : vector<8x16xf32>
    %105 = tpu.matmul %103, %104, %cst_45 {dimension_numbers = #tpu.dot_dimension_numbers<[1], [0], [0], [1], [0, 0, 1, 1], [], []>} : vector<8x16xf32>, vector<16x16xf32>, vector<8x16xf32> -> vector<8x16xf32>
    %106 = arith.addf %102, %105 : vector<8x16xf32>
    %107 = vector.extract_strided_slice %89 {offsets = [0, 0], sizes = [8, 1], strides = [1, 1]} : vector<32x1xf32> to vector<8x1xf32>
    %108 = vector.broadcast %107 : vector<8x1xf32> to vector<8x16xf32>
    %109 = arith.addf %106, %108 : vector<8x16xf32>
    %cst_46 = arith.constant 0.000000e+00 : f32
    %110 = vector.broadcast %cst_46 : f32 to vector<8x16xf32>
    %111 = arith.maximumf %109, %110 : vector<8x16xf32>
    %112 = vector.extract_strided_slice %88 {offsets = [8, 0], sizes = [8, 16], strides = [1, 1]} : vector<32x64xf32> to vector<8x16xf32>
    %113 = vector.extract_strided_slice %91 {offsets = [0, 0], sizes = [16, 16], strides = [1, 1]} : vector<16x64xf32> to vector<16x16xf32>
    %cst_47 = arith.constant dense<0.000000e+00> : vector<8x16xf32>
    %114 = tpu.matmul %112, %113, %cst_47 {dimension_numbers = #tpu.dot_dimension_numbers<[1], [0], [0], [1], [0, 0, 1, 1], [], []>} : vector<8x16xf32>, vector<16x16xf32>, vector<8x16xf32> -> vector<8x16xf32>
    %115 = vector.extract_strided_slice %88 {offsets = [8, 32], sizes = [8, 16], strides = [1, 1]} : vector<32x64xf32> to vector<8x16xf32>
    %116 = vector.extract_strided_slice %91 {offsets = [0, 32], sizes = [16, 16], strides = [1, 1]} : vector<16x64xf32> to vector<16x16xf32>
    %cst_48 = arith.constant dense<0.000000e+00> : vector<8x16xf32>
    %117 = tpu.matmul %115, %116, %cst_48 {dimension_numbers = #tpu.dot_dimension_numbers<[1], [0], [0], [1], [0, 0, 1, 1], [], []>} : vector<8x16xf32>, vector<16x16xf32>, vector<8x16xf32> -> vector<8x16xf32>
    %118 = arith.addf %114, %117 : vector<8x16xf32>
    %119 = vector.extract_strided_slice %89 {offsets = [8, 0], sizes = [8, 1], strides = [1, 1]} : vector<32x1xf32> to vector<8x1xf32>
    %120 = vector.broadcast %119 : vector<8x1xf32> to vector<8x16xf32>
    %121 = arith.addf %118, %120 : vector<8x16xf32>
    %cst_49 = arith.constant 0.000000e+00 : f32
    %122 = vector.broadcast %cst_49 : f32 to vector<8x16xf32>
    %123 = arith.maximumf %121, %122 : vector<8x16xf32>
    %124 = vector.extract_strided_slice %88 {offsets = [16, 0], sizes = [8, 16], strides = [1, 1]} : vector<32x64xf32> to vector<8x16xf32>
    %125 = vector.extract_strided_slice %91 {offsets = [0, 0], sizes = [16, 16], strides = [1, 1]} : vector<16x64xf32> to vector<16x16xf32>
    %cst_50 = arith.constant dense<0.000000e+00> : vector<8x16xf32>
    %126 = tpu.matmul %124, %125, %cst_50 {dimension_numbers = #tpu.dot_dimension_numbers<[1], [0], [0], [1], [0, 0, 1, 1], [], []>} : vector<8x16xf32>, vector<16x16xf32>, vector<8x16xf32> -> vector<8x16xf32>
    %127 = vector.extract_strided_slice %88 {offsets = [16, 16], sizes = [8, 16], strides = [1, 1]} : vector<32x64xf32> to vector<8x16xf32>
    %128 = vector.extract_strided_slice %91 {offsets = [0, 16], sizes = [16, 16], strides = [1, 1]} : vector<16x64xf32> to vector<16x16xf32>
    %cst_51 = arith.constant dense<0.000000e+00> : vector<8x16xf32>
    %129 = tpu.matmul %127, %128, %cst_51 {dimension_numbers = #tpu.dot_dimension_numbers<[1], [0], [0], [1], [0, 0, 1, 1], [], []>} : vector<8x16xf32>, vector<16x16xf32>, vector<8x16xf32> -> vector<8x16xf32>
    %130 = arith.addf %126, %129 : vector<8x16xf32>
    %131 = vector.extract_strided_slice %89 {offsets = [16, 0], sizes = [8, 1], strides = [1, 1]} : vector<32x1xf32> to vector<8x1xf32>
    %132 = vector.broadcast %131 : vector<8x1xf32> to vector<8x16xf32>
    %133 = arith.addf %130, %132 : vector<8x16xf32>
    %cst_52 = arith.constant 0.000000e+00 : f32
    %134 = vector.broadcast %cst_52 : f32 to vector<8x16xf32>
    %135 = arith.maximumf %133, %134 : vector<8x16xf32>
    %136 = vector.extract_strided_slice %88 {offsets = [24, 0], sizes = [8, 16], strides = [1, 1]} : vector<32x64xf32> to vector<8x16xf32>
    %137 = vector.extract_strided_slice %91 {offsets = [0, 0], sizes = [16, 16], strides = [1, 1]} : vector<16x64xf32> to vector<16x16xf32>
    %cst_53 = arith.constant dense<0.000000e+00> : vector<8x16xf32>
    %138 = tpu.matmul %136, %137, %cst_53 {dimension_numbers = #tpu.dot_dimension_numbers<[1], [0], [0], [1], [0, 0, 1, 1], [], []>} : vector<8x16xf32>, vector<16x16xf32>, vector<8x16xf32> -> vector<8x16xf32>
    %139 = vector.extract_strided_slice %89 {offsets = [24, 0], sizes = [8, 1], strides = [1, 1]} : vector<32x1xf32> to vector<8x1xf32>
    %140 = vector.broadcast %139 : vector<8x1xf32> to vector<8x16xf32>
    %141 = arith.addf %138, %140 : vector<8x16xf32>
    %cst_54 = arith.constant 0.000000e+00 : f32
    %142 = vector.broadcast %cst_54 : f32 to vector<8x16xf32>
    %143 = arith.maximumf %141, %142 : vector<8x16xf32>
    %c0_55 = arith.constant 0 : index
    %c0_56 = arith.constant 0 : index
    %144 = vector.load %arg12[%c0_55, %c0_56] : memref<16x32xf32, #tpu.memory_space<vmem>>, vector<16x32xf32>
    %c0_57 = arith.constant 0 : index
    %c0_58 = arith.constant 0 : index
    %145 = vector.load %arg13[%c0_57, %c0_58] : memref<16x1xf32, #tpu.memory_space<vmem>>, vector<16x1xf32>
    %c0_59 = arith.constant 0 : index
    %c0_60 = arith.constant 0 : index
    %146 = vector.load %arg11[%c0_59, %c0_60] : memref<64x256xf32, #tpu.memory_space<vmem>>, vector<16x256xf32>
    %cst_61 = arith.constant dense<0.000000e+00> : vector<8x256xf32>
    %147 = tpu.matmul %111, %146, %cst_61 {dimension_numbers = #tpu.dot_dimension_numbers<[1], [0], [0], [1], [0, 0, 1, 1], [], []>} : vector<8x16xf32>, vector<16x256xf32>, vector<8x256xf32> -> vector<8x256xf32>
    %c16 = arith.constant 16 : index
    %c0_62 = arith.constant 0 : index
    %148 = vector.load %arg11[%c16, %c0_62] : memref<64x256xf32, #tpu.memory_space<vmem>>, vector<16x256xf32>
    %cst_63 = arith.constant dense<0.000000e+00> : vector<8x256xf32>
    %149 = tpu.matmul %123, %148, %cst_63 {dimension_numbers = #tpu.dot_dimension_numbers<[1], [0], [0], [1], [0, 0, 1, 1], [], []>} : vector<8x16xf32>, vector<16x256xf32>, vector<8x256xf32> -> vector<8x256xf32>
    %150 = arith.addf %147, %149 : vector<8x256xf32>
    %c32 = arith.constant 32 : index
    %c0_64 = arith.constant 0 : index
    %151 = vector.load %arg11[%c32, %c0_64] : memref<64x256xf32, #tpu.memory_space<vmem>>, vector<16x256xf32>
    %cst_65 = arith.constant dense<0.000000e+00> : vector<8x256xf32>
    %152 = tpu.matmul %135, %151, %cst_65 {dimension_numbers = #tpu.dot_dimension_numbers<[1], [0], [0], [1], [0, 0, 1, 1], [], []>} : vector<8x16xf32>, vector<16x256xf32>, vector<8x256xf32> -> vector<8x256xf32>
    %153 = arith.addf %150, %152 : vector<8x256xf32>
    %c48 = arith.constant 48 : index
    %c0_66 = arith.constant 0 : index
    %154 = vector.load %arg11[%c48, %c0_66] : memref<64x256xf32, #tpu.memory_space<vmem>>, vector<16x256xf32>
    %cst_67 = arith.constant dense<0.000000e+00> : vector<8x256xf32>
    %155 = tpu.matmul %143, %154, %cst_67 {dimension_numbers = #tpu.dot_dimension_numbers<[1], [0], [0], [1], [0, 0, 1, 1], [], []>} : vector<8x16xf32>, vector<16x256xf32>, vector<8x256xf32> -> vector<8x256xf32>
    %156 = arith.addf %153, %155 : vector<8x256xf32>
    %157 = vector.extract_strided_slice %144 {offsets = [0, 0], sizes = [4, 8], strides = [1, 1]} : vector<16x32xf32> to vector<4x8xf32>
    %158 = vector.extract_strided_slice %156 {offsets = [0, 0], sizes = [8, 64], strides = [1, 1]} : vector<8x256xf32> to vector<8x64xf32>
    %cst_68 = arith.constant dense<0.000000e+00> : vector<4x64xf32>
    %159 = tpu.matmul %157, %158, %cst_68 {dimension_numbers = #tpu.dot_dimension_numbers<[1], [0], [0], [1], [0, 0, 1, 1], [], []>} : vector<4x8xf32>, vector<8x64xf32>, vector<4x64xf32> -> vector<4x64xf32>
    %160 = vector.extract_strided_slice %144 {offsets = [0, 8], sizes = [4, 8], strides = [1, 1]} : vector<16x32xf32> to vector<4x8xf32>
    %161 = vector.extract_strided_slice %156 {offsets = [0, 64], sizes = [8, 64], strides = [1, 1]} : vector<8x256xf32> to vector<8x64xf32>
    %cst_69 = arith.constant dense<0.000000e+00> : vector<4x64xf32>
    %162 = tpu.matmul %160, %161, %cst_69 {dimension_numbers = #tpu.dot_dimension_numbers<[1], [0], [0], [1], [0, 0, 1, 1], [], []>} : vector<4x8xf32>, vector<8x64xf32>, vector<4x64xf32> -> vector<4x64xf32>
    %163 = arith.addf %159, %162 : vector<4x64xf32>
    %164 = vector.extract_strided_slice %144 {offsets = [0, 16], sizes = [4, 8], strides = [1, 1]} : vector<16x32xf32> to vector<4x8xf32>
    %165 = vector.extract_strided_slice %156 {offsets = [0, 128], sizes = [8, 64], strides = [1, 1]} : vector<8x256xf32> to vector<8x64xf32>
    %cst_70 = arith.constant dense<0.000000e+00> : vector<4x64xf32>
    %166 = tpu.matmul %164, %165, %cst_70 {dimension_numbers = #tpu.dot_dimension_numbers<[1], [0], [0], [1], [0, 0, 1, 1], [], []>} : vector<4x8xf32>, vector<8x64xf32>, vector<4x64xf32> -> vector<4x64xf32>
    %167 = arith.addf %163, %166 : vector<4x64xf32>
    %168 = vector.extract_strided_slice %144 {offsets = [0, 24], sizes = [4, 8], strides = [1, 1]} : vector<16x32xf32> to vector<4x8xf32>
    %169 = vector.extract_strided_slice %156 {offsets = [0, 192], sizes = [8, 64], strides = [1, 1]} : vector<8x256xf32> to vector<8x64xf32>
    %cst_71 = arith.constant dense<0.000000e+00> : vector<4x64xf32>
    %170 = tpu.matmul %168, %169, %cst_71 {dimension_numbers = #tpu.dot_dimension_numbers<[1], [0], [0], [1], [0, 0, 1, 1], [], []>} : vector<4x8xf32>, vector<8x64xf32>, vector<4x64xf32> -> vector<4x64xf32>
    %171 = arith.addf %167, %170 : vector<4x64xf32>
    %172 = vector.extract_strided_slice %145 {offsets = [0, 0], sizes = [4, 1], strides = [1, 1]} : vector<16x1xf32> to vector<4x1xf32>
    %173 = vector.broadcast %172 : vector<4x1xf32> to vector<4x64xf32>
    %174 = arith.addf %171, %173 : vector<4x64xf32>
    %cst_72 = arith.constant 0.000000e+00 : f32
    %175 = vector.broadcast %cst_72 : f32 to vector<4x64xf32>
    %176 = arith.maximumf %174, %175 : vector<4x64xf32>
    %177 = vector.extract_strided_slice %144 {offsets = [4, 0], sizes = [4, 8], strides = [1, 1]} : vector<16x32xf32> to vector<4x8xf32>
    %178 = vector.extract_strided_slice %156 {offsets = [0, 0], sizes = [8, 64], strides = [1, 1]} : vector<8x256xf32> to vector<8x64xf32>
    %cst_73 = arith.constant dense<0.000000e+00> : vector<4x64xf32>
    %179 = tpu.matmul %177, %178, %cst_73 {dimension_numbers = #tpu.dot_dimension_numbers<[1], [0], [0], [1], [0, 0, 1, 1], [], []>} : vector<4x8xf32>, vector<8x64xf32>, vector<4x64xf32> -> vector<4x64xf32>
    %180 = vector.extract_strided_slice %144 {offsets = [4, 16], sizes = [4, 8], strides = [1, 1]} : vector<16x32xf32> to vector<4x8xf32>
    %181 = vector.extract_strided_slice %156 {offsets = [0, 128], sizes = [8, 64], strides = [1, 1]} : vector<8x256xf32> to vector<8x64xf32>
    %cst_74 = arith.constant dense<0.000000e+00> : vector<4x64xf32>
    %182 = tpu.matmul %180, %181, %cst_74 {dimension_numbers = #tpu.dot_dimension_numbers<[1], [0], [0], [1], [0, 0, 1, 1], [], []>} : vector<4x8xf32>, vector<8x64xf32>, vector<4x64xf32> -> vector<4x64xf32>
    %183 = arith.addf %179, %182 : vector<4x64xf32>
    %184 = vector.extract_strided_slice %145 {offsets = [4, 0], sizes = [4, 1], strides = [1, 1]} : vector<16x1xf32> to vector<4x1xf32>
    %185 = vector.broadcast %184 : vector<4x1xf32> to vector<4x64xf32>
    %186 = arith.addf %183, %185 : vector<4x64xf32>
    %cst_75 = arith.constant 0.000000e+00 : f32
    %187 = vector.broadcast %cst_75 : f32 to vector<4x64xf32>
    %188 = arith.maximumf %186, %187 : vector<4x64xf32>
    %189 = vector.extract_strided_slice %144 {offsets = [8, 0], sizes = [4, 8], strides = [1, 1]} : vector<16x32xf32> to vector<4x8xf32>
    %190 = vector.extract_strided_slice %156 {offsets = [0, 0], sizes = [8, 64], strides = [1, 1]} : vector<8x256xf32> to vector<8x64xf32>
    %cst_76 = arith.constant dense<0.000000e+00> : vector<4x64xf32>
    %191 = tpu.matmul %189, %190, %cst_76 {dimension_numbers = #tpu.dot_dimension_numbers<[1], [0], [0], [1], [0, 0, 1, 1], [], []>} : vector<4x8xf32>, vector<8x64xf32>, vector<4x64xf32> -> vector<4x64xf32>
    %192 = vector.extract_strided_slice %144 {offsets = [8, 8], sizes = [4, 8], strides = [1, 1]} : vector<16x32xf32> to vector<4x8xf32>
    %193 = vector.extract_strided_slice %156 {offsets = [0, 64], sizes = [8, 64], strides = [1, 1]} : vector<8x256xf32> to vector<8x64xf32>
    %cst_77 = arith.constant dense<0.000000e+00> : vector<4x64xf32>
    %194 = tpu.matmul %192, %193, %cst_77 {dimension_numbers = #tpu.dot_dimension_numbers<[1], [0], [0], [1], [0, 0, 1, 1], [], []>} : vector<4x8xf32>, vector<8x64xf32>, vector<4x64xf32> -> vector<4x64xf32>
    %195 = arith.addf %191, %194 : vector<4x64xf32>
    %196 = vector.extract_strided_slice %145 {offsets = [8, 0], sizes = [4, 1], strides = [1, 1]} : vector<16x1xf32> to vector<4x1xf32>
    %197 = vector.broadcast %196 : vector<4x1xf32> to vector<4x64xf32>
    %198 = arith.addf %195, %197 : vector<4x64xf32>
    %cst_78 = arith.constant 0.000000e+00 : f32
    %199 = vector.broadcast %cst_78 : f32 to vector<4x64xf32>
    %200 = arith.maximumf %198, %199 : vector<4x64xf32>
    %201 = vector.extract_strided_slice %144 {offsets = [12, 0], sizes = [4, 8], strides = [1, 1]} : vector<16x32xf32> to vector<4x8xf32>
    %202 = vector.extract_strided_slice %156 {offsets = [0, 0], sizes = [8, 64], strides = [1, 1]} : vector<8x256xf32> to vector<8x64xf32>
    %cst_79 = arith.constant dense<0.000000e+00> : vector<4x64xf32>
    %203 = tpu.matmul %201, %202, %cst_79 {dimension_numbers = #tpu.dot_dimension_numbers<[1], [0], [0], [1], [0, 0, 1, 1], [], []>} : vector<4x8xf32>, vector<8x64xf32>, vector<4x64xf32> -> vector<4x64xf32>
    %204 = vector.extract_strided_slice %145 {offsets = [12, 0], sizes = [4, 1], strides = [1, 1]} : vector<16x1xf32> to vector<4x1xf32>
    %205 = vector.broadcast %204 : vector<4x1xf32> to vector<4x64xf32>
    %206 = arith.addf %203, %205 : vector<4x64xf32>
    %cst_80 = arith.constant 0.000000e+00 : f32
    %207 = vector.broadcast %cst_80 : f32 to vector<4x64xf32>
    %208 = arith.maximumf %206, %207 : vector<4x64xf32>
    %c0_81 = arith.constant 0 : index
    %c0_82 = arith.constant 0 : index
    %c0_83 = arith.constant 0 : index
    %209 = vector.load %arg14[%c0_81, %c0_82, %c0_83] : memref<1x16x64xf32, #tpu.memory_space<vmem>>, vector<1x4x64xf32>
    %210 = vector.shape_cast %209 : vector<1x4x64xf32> to vector<4x64xf32>
    %211 = vector.shape_cast %176 : vector<4x64xf32> to vector<1x4x64xf32>
    tpu.vector_store %arg14[%c0_81, %c0_82, %c0_83], %211 {strides = array<i32>} : memref<1x16x64xf32, #tpu.memory_space<vmem>>, vector<1x4x64xf32>,
    %c0_84 = arith.constant 0 : index
    %c4 = arith.constant 4 : index
    %c0_85 = arith.constant 0 : index
    %212 = vector.load %arg14[%c0_84, %c4, %c0_85] : memref<1x16x64xf32, #tpu.memory_space<vmem>>, vector<1x4x64xf32>
    %213 = vector.shape_cast %212 : vector<1x4x64xf32> to vector<4x64xf32>
    %214 = vector.shape_cast %188 : vector<4x64xf32> to vector<1x4x64xf32>
    tpu.vector_store %arg14[%c0_84, %c4, %c0_85], %214 {strides = array<i32>} : memref<1x16x64xf32, #tpu.memory_space<vmem>>, vector<1x4x64xf32>,
    %c0_86 = arith.constant 0 : index
    %c8 = arith.constant 8 : index
    %c0_87 = arith.constant 0 : index
    %215 = vector.load %arg14[%c0_86, %c8, %c0_87] : memref<1x16x64xf32, #tpu.memory_space<vmem>>, vector<1x4x64xf32>
    %216 = vector.shape_cast %215 : vector<1x4x64xf32> to vector<4x64xf32>
    %217 = vector.shape_cast %200 : vector<4x64xf32> to vector<1x4x64xf32>
    tpu.vector_store %arg14[%c0_86, %c8, %c0_87], %217 {strides = array<i32>} : memref<1x16x64xf32, #tpu.memory_space<vmem>>, vector<1x4x64xf32>,
    %c0_88 = arith.constant 0 : index
    %c12 = arith.constant 12 : index
    %c0_89 = arith.constant 0 : index
    %218 = vector.load %arg14[%c0_88, %c12, %c0_89] : memref<1x16x64xf32, #tpu.memory_space<vmem>>, vector<1x4x64xf32>
    %219 = vector.shape_cast %218 : vector<1x4x64xf32> to vector<4x64xf32>
    %220 = vector.shape_cast %208 : vector<4x64xf32> to vector<1x4x64xf32>
    tpu.vector_store %arg14[%c0_88, %c12, %c0_89], %220 {strides = array<i32>} : memref<1x16x64xf32, #tpu.memory_space<vmem>>, vector<1x4x64xf32>,
    return
  }
  func.func @transform_0(%arg0: i32) -> (i32, i32, i32) {
    %c0_i32 = arith.constant 0 : i32
    %c0_i32_0 = arith.constant 0 : i32
    %c0_i32_1 = arith.constant 0 : i32
    return %arg0, %c0_i32, %c0_i32_0 : i32, i32, i32
  }
  func.func @transform_1(%arg0: i32) -> (i32, i32) {
    %c0_i32 = arith.constant 0 : i32
    %c0_i32_0 = arith.constant 0 : i32
    %c0_i32_1 = arith.constant 0 : i32
    return %c0_i32, %c0_i32_0 : i32, i32
  }
  func.func @transform_2(%arg0: i32) -> (i32, i32) {
    %c0_i32 = arith.constant 0 : i32
    %c0_i32_0 = arith.constant 0 : i32
    %c0_i32_1 = arith.constant 0 : i32
    return %c0_i32, %c0_i32_0 : i32, i32
  }
  func.func @transform_3(%arg0: i32) -> (i32, i32) {
    %c0_i32 = arith.constant 0 : i32
    %c0_i32_0 = arith.constant 0 : i32
    %c0_i32_1 = arith.constant 0 : i32
    return %c0_i32, %c0_i32_0 : i32, i32
  }
  func.func @transform_4(%arg0: i32) -> (i32, i32) {
    %c0_i32 = arith.constant 0 : i32
    %c0_i32_0 = arith.constant 0 : i32
    %c0_i32_1 = arith.constant 0 : i32
    return %c0_i32, %c0_i32_0 : i32, i32
  }
  func.func @transform_5(%arg0: i32) -> (i32, i32) {
    %c0_i32 = arith.constant 0 : i32
    %c0_i32_0 = arith.constant 0 : i32
    %c0_i32_1 = arith.constant 0 : i32
    return %c0_i32, %c0_i32_0 : i32, i32
  }
  func.func @transform_6(%arg0: i32) -> (i32, i32) {
    %c0_i32 = arith.constant 0 : i32
    %c0_i32_0 = arith.constant 0 : i32
    %c0_i32_1 = arith.constant 0 : i32
    return %c0_i32, %c0_i32_0 : i32, i32
  }
  func.func @transform_7(%arg0: i32) -> (i32, i32) {
    %c0_i32 = arith.constant 0 : i32
    %c0_i32_0 = arith.constant 0 : i32
    %c0_i32_1 = arith.constant 0 : i32
    return %c0_i32, %c0_i32_0 : i32, i32
  }
  func.func @transform_8(%arg0: i32) -> (i32, i32) {
    %c0_i32 = arith.constant 0 : i32
    %c0_i32_0 = arith.constant 0 : i32
    %c0_i32_1 = arith.constant 0 : i32
    return %c0_i32, %c0_i32_0 : i32, i32
  }
  func.func @transform_9(%arg0: i32) -> (i32, i32) {
    %c0_i32 = arith.constant 0 : i32
    %c0_i32_0 = arith.constant 0 : i32
    %c0_i32_1 = arith.constant 0 : i32
    return %c0_i32, %c0_i32_0 : i32, i32
  }
  func.func @transform_10(%arg0: i32) -> (i32, i32) {
    %c0_i32 = arith.constant 0 : i32
    %c0_i32_0 = arith.constant 0 : i32
    %c0_i32_1 = arith.constant 0 : i32
    return %c0_i32, %c0_i32_0 : i32, i32
  }
  func.func @transform_11(%arg0: i32) -> (i32, i32) {
    %c0_i32 = arith.constant 0 : i32
    %c0_i32_0 = arith.constant 0 : i32
    %c0_i32_1 = arith.constant 0 : i32
    return %c0_i32, %c0_i32_0 : i32, i32
  }
  func.func @transform_12(%arg0: i32) -> (i32, i32) {
    %c0_i32 = arith.constant 0 : i32
    %c0_i32_0 = arith.constant 0 : i32
    %c0_i32_1 = arith.constant 0 : i32
    return %c0_i32, %c0_i32_0 : i32, i32
  }
  func.func @transform_13(%arg0: i32) -> (i32, i32, i32) {
    %c0_i32 = arith.constant 0 : i32
    %c0_i32_0 = arith.constant 0 : i32
    %c0_i32_1 = arith.constant 0 : i32
    return %arg0, %c0_i32, %c0_i32_0 : i32, i32, i32
  }
}

</mosaic_0001>

<bundles_post_ra>
// kernel: conv_ae_forward.1
= control target key start
LH: loop header
LB: loop body
LE: loop exit
PB: predicated region body
PF: predicated region fallthrough
CT: control target
= control target key end

     0   :  { %s2479_s25 = smov 0   ;;  %s3295_s0 = inlined_call_operand.vmem [shape: f32[2,4,256], index: 0, kind: input, shape index: {}]   ;;  %s3296_s1 = inlined_call_operand.vmem [shape: f32[256,576], index: 1, kind: input, shape index: {}]   ;;  %s3297_s2 = inlined_call_operand.vmem [shape: f32[8,36], index: 2, kind: input, shape index: {}]   ;;  %s3298_s3 = inlined_call_operand.vmem [shape: f32[8,1], index: 3, kind: input, shape index: {}]   ;;  %s3299_s4 = inlined_call_operand.vmem [shape: f32[64,144], index: 4, kind: input, shape index: {}]   ;;  %s3300_s5 = inlined_call_operand.vmem [shape: f32[16,72], index: 5, kind: input, shape index: {}]   ;;  %s3301_s6 = inlined_call_operand.vmem [shape: f32[16,1], index: 6, kind: input, shape index: {}]   ;;  %s3302_s7 = inlined_call_operand.vmem [shape: f32[16,64], index: 7, kind: input, shape index: {}]   ;;  %s3303_s8 = inlined_call_operand.vmem [shape: f32[32,64], index: 8, kind: input, shape index: {}]   ;;  %s3304_s9 = inlined_call_operand.vmem [shape: f32[32,1], index: 9, kind: input, shape index: {}]   ;;  %s3305_s10 = inlined_call_operand.vmem [shape: f32[64,256], index: 10, kind: input, shape index: {}]   ;;  %s3306_s11 = inlined_call_operand.vmem [shape: f32[16,32], index: 11, kind: input, shape index: {}]   ;;  %s3307_s12 = inlined_call_operand.vmem [shape: f32[16,1], index: 12, kind: input, shape index: {}]   ;;  %s3308_s13 = inlined_call_operand.vmem [shape: f32[2,16,64], index: 13, kind: output, shape index: {}]  }
   0x1 LB: > { %s2264_s26 = sadd.s32 4294967295, %s2391_s25   ;;  %p2268_p0 = scmp.ge.s32.totalorder %s2391_s25, 1  ;;  %s2391_s25 = sphi %s2479_s25, %s23_s25  }
   0x2   : > { %p387_p1 = scmp.lt.s32.totalorder %s2391_s25, 3 }
   0x4   : > { %p388_p2 = pnand %p2268_p0, %p387_p1 }
   0x5   : > { %p2543_p3 = scmp.lt.s32.totalorder (!%p388_p2), %s2264_s26, 1  ;;  %s2393_s15 = smov (!%p388_p2), 120  }
   0x6   : > { %391 = sbr.rel (%p388_p2) target bundleno = 1701 (0x6a5), region = 72  ;;  %s2394_s17 = smov (!%p388_p2), 116  }
   0x7   : > { %s2395_s14 = smov (!%p388_p2), 112   ;;  %s2396_s22 = smov (!%p388_p2), 104  }
   0x8   : > { %s2397_s23 = smov (!%p388_p2), 96   ;;  %s2399_s27 = smov (!%p388_p2), 124  }
   0x9   : > { %s2400_s28 = smov (!%p388_p2), 108   ;;  %s2401_s29 = smov (!%p388_p2), 100  }
   0xa   : > { %s2405_s30 = smov (!%p388_p2), 72   ;;  %s2408_s18 = smov (!%p388_p2), 32  }
   0xb   : > { %v519_v0 = vld [vmem:[%s3296_s1 + $0x258] sm:$0xff]  ;;  %v514_v2 = vld [vmem:[%s3296_s1 + $0x230] sm:$0xff]  ;;  %v520_v4 = vld [vmem:[%s3296_s1 + $0x260] sm:$0xff]  ;;  %s3311_s26 = smov (!%p2543_p3, %s2264_s26), 1  ;;  %vm819_vm0 = vcmask 1043456   ;;  %vm816_vm1 = vcmask 31744  }
   0xc   : > { %v599_v1 = vld [vmem:[%s3296_s1 + $0x4d8] sm:$0xff]  ;;  %610 = vmatpush.msra.mxu0 %v519_v0  ;;  %v594_v3 = vld [vmem:[%s3296_s1 + $0x4b0] sm:$0xff]  ;;  %v600_v5 = vld [vmem:[%s3296_s1 + $0x4e0] sm:$0xff]  ;;  %650 = vmatpush.msra.mxu2 %v520_v4  ;;  %s2341_s20 = sshll.u32 %s3311_s26, 3  ;;  %vm1092_vm2 = vcmask 523264   ;;  %vm1146_vm3 = vcmask 64512  }
   0xd   : > { %630 = vmatpush.msra.mxu1 %v599_v1  ;;  %670 = vmatpush.msra.mxu3 %v600_v5  ;;  %v509_v6 = vld [vmem:[%s3296_s1 + $0x208] sm:$0xff]  ;;  %v515_v8 = vld [vmem:[%s3296_s1 + $0x238] sm:$0xff]  ;;  %v504_v10 = vld [vmem:[%s3296_s1 + $0x1e0] sm:$0xff]  ;;  %s435_s21 = scalar_lea.vmem %s3295_s0, %s2341_s20  ;;  %s2406_s20 = smov 16   ;;  %vm1474_vm4 = vcmask 130048   ;;  %vm2204_vm5 = vcmask 519168  }
   0xe   : > { %v589_v7 = vld [vmem:[%s3296_s1 + $0x488] sm:$0xff]  ;;  %611 = vmatpush.msra.mxu0 %v514_v2  ;;  %v595_v9 = vld [vmem:[%s3296_s1 + $0x4b8] sm:$0xff]  ;;  %651 = vmatpush.msra.mxu2 %v515_v8  ;;  %v584_v11 = vld [vmem:[%s3296_s1 + $0x460] sm:$0xff] }
   0xf   : > { %631 = vmatpush.msra.mxu1 %v594_v3  ;;  %671 = vmatpush.msra.mxu3 %v595_v9  ;;  %v510_v12 = vld [vmem:[%s3296_s1 + $0x210] sm:$0xff]  ;;  %v505_v14 = vld [vmem:[%s3296_s1 + $0x1e8] sm:$0xff]  ;;  %v499_v16 = vld [vmem:[%s3296_s1 + $0x1b8] sm:$0xff] }
  0x10   : > { %v590_v13 = vld [vmem:[%s3296_s1 + $0x490] sm:$0xff]  ;;  %612 = vmatpush.msra.mxu0 %v509_v6  ;;  %v585_v15 = vld [vmem:[%s3296_s1 + $0x468] sm:$0xff]  ;;  %652 = vmatpush.msra.mxu2 %v510_v12  ;;  %v579_v17 = vld [vmem:[%s3296_s1 + $0x438] sm:$0xff] }
  0x11   : > { %632 = vmatpush.msra.mxu1 %v589_v7  ;;  %672 = vmatpush.msra.mxu3 %v590_v13  ;;  %v500_v18 = vld [vmem:[%s3296_s1 + $0x1c0] sm:$0xff]  ;;  %v494_v20 = vld [vmem:[%s3296_s1 + $0x190] sm:$0xff]  ;;  %v495_v22 = vld [vmem:[%s3296_s1 + $0x198] sm:$0xff] }
  0x12   : > { %613 = vmatpush.msra.mxu0 %v504_v10  ;;  %v580_v19 = vld [vmem:[%s3296_s1 + $0x440] sm:$0xff]  ;;  %653 = vmatpush.msra.mxu2 %v505_v14  ;;  %v574_v21 = vld [vmem:[%s3296_s1 + $0x410] sm:$0xff]  ;;  %v575_v23 = vld [vmem:[%s3296_s1 + $0x418] sm:$0xff] }
  0x13   : > { %633 = vmatpush.msra.mxu1 %v584_v11  ;;  %673 = vmatpush.msra.mxu3 %v585_v15  ;;  %v489_v24 = vld [vmem:[%s3296_s1 + $0x168] sm:$0xff]  ;;  %v490_v26 = vld [vmem:[%s3296_s1 + $0x170] sm:$0xff]  ;;  %v484_v28 = vld [vmem:[%s3296_s1 + $0x140] sm:$0xff] }
  0x14   : > { %614 = vmatpush.msra.mxu0 %v499_v16  ;;  %654 = vmatpush.msra.mxu2 %v500_v18  ;;  %v569_v25 = vld [vmem:[%s3296_s1 + $0x3e8] sm:$0xff]  ;;  %v570_v27 = vld [vmem:[%s3296_s1 + $0x3f0] sm:$0xff]  ;;  %v564_v29 = vld [vmem:[%s3296_s1 + $0x3c0] sm:$0xff] }
  0x15   : > { %634 = vmatpush.msra.mxu1 %v579_v17  ;;  %674 = vmatpush.msra.mxu3 %v580_v19  ;;  %v485_v30 = vld [vmem:[%s3296_s1 + $0x148] sm:$0xff]  ;;  %v479_v32 = vld [vmem:[%s3296_s1 + $0x118] sm:$0xff]  ;;  %v480_v34 = vld [vmem:[%s3296_s1 + $0x120] sm:$0xff] }
  0x16   : > { %615 = vmatpush.msra.mxu0 %v494_v20  ;;  %655 = vmatpush.msra.mxu2 %v495_v22  ;;  %v565_v31 = vld [vmem:[%s3296_s1 + $0x3c8] sm:$0xff]  ;;  %v559_v33 = vld [vmem:[%s3296_s1 + $0x398] sm:$0xff]  ;;  %v560_v35 = vld [vmem:[%s3296_s1 + $0x3a0] sm:$0xff] }
  0x17   : > { %635 = vmatpush.msra.mxu1 %v574_v21  ;;  %675 = vmatpush.msra.mxu3 %v575_v23  ;;  %v474_v36 = vld [vmem:[%s3296_s1 + $0xf0] sm:$0xff]  ;;  %v475_v38 = vld [vmem:[%s3296_s1 + $0xf8] sm:$0xff]  ;;  %v469_v40 = vld [vmem:[%s3296_s1 + $0xc8] sm:$0xff] }
  0x18   : > { %616 = vmatpush.msra.mxu0 %v489_v24  ;;  %656 = vmatpush.msra.mxu2 %v490_v26  ;;  %v554_v37 = vld [vmem:[%s3296_s1 + $0x370] sm:$0xff]  ;;  %v555_v39 = vld [vmem:[%s3296_s1 + $0x378] sm:$0xff]  ;;  %v549_v41 = vld [vmem:[%s3296_s1 + $0x348] sm:$0xff] }
  0x19   : > { %636 = vmatpush.msra.mxu1 %v569_v25  ;;  %676 = vmatpush.msra.mxu3 %v570_v27  ;;  %v470_v42 = vld [vmem:[%s3296_s1 + $0xd0] sm:$0xff]  ;;  %v464_v44 = vld [vmem:[%s3296_s1 + $0xa0] sm:$0xff]  ;;  %v465_v47 = vld [vmem:[%s3296_s1 + $0xa8] sm:$0xff] }
  0x1a   : > { %617 = vmatpush.msra.mxu0 %v484_v28  ;;  %657 = vmatpush.msra.mxu2 %v485_v30  ;;  %v550_v43 = vld [vmem:[%s3296_s1 + $0x350] sm:$0xff]  ;;  %v544_v45 = vld [vmem:[%s3296_s1 + $0x320] sm:$0xff]  ;;  %v545_v48 = vld [vmem:[%s3296_s1 + $0x328] sm:$0xff] }
  0x1b   : > { %637 = vmatpush.msra.mxu1 %v564_v29  ;;  %677 = vmatpush.msra.mxu3 %v565_v31  ;;  %v441_v46 = vld [vmem:[%s435_s21] sm:$0xff]  ;;  %v459_v49 = vld [vmem:[%s3296_s1 + $0x78] sm:$0xff]  ;;  %v454_v53 = vld [vmem:[%s3296_s1 + $0x50] sm:$0xff]  ;;  %s2398_s21 = smov 64  }
  0x1c   : > { %618 = vmatpush.msra.mxu0 %v479_v32  ;;  %658 = vmatpush.msra.mxu2 %v480_v34  ;;  %605 = vst [vmem:[#allocation1] ss:$2 sm:$0xff] %v441_v46  ;;  %v539_v50 = vld [vmem:[%s3296_s1 + $0x2f8] sm:$0xff]  ;;  %v460_v51 = vld [vmem:[%s3296_s1 + $0x80] sm:$0xff]  ;;  %v534_v54 = vld [vmem:[%s3296_s1 + $0x2d0] sm:$0xff] }
  0x1d   : > { %638 = vmatpush.msra.mxu1 %v559_v33  ;;  %678 = vmatpush.msra.mxu3 %v560_v35  ;;  %v540_v52 = vld [vmem:[%s3296_s1 + $0x300] sm:$0xff]  ;;  %v455_v55 = vld [vmem:[%s3296_s1 + $0x58] sm:$0xff]  ;;  %v449_v57 = vld [vmem:[%s3296_s1 + $0x28] sm:$0xff] }
  0x1e   : > { %619 = vmatpush.msra.mxu0 %v474_v36  ;;  %659 = vmatpush.msra.mxu2 %v475_v38  ;;  %v535_v56 = vld [vmem:[%s3296_s1 + $0x2d8] sm:$0xff]  ;;  %v529_v58 = vld [vmem:[%s3296_s1 + $0x2a8] sm:$0xff]  ;;  %v450_v59 = vld [vmem:[%s3296_s1 + $0x30] sm:$0xff] }
  0x1f   : > { %639 = vmatpush.msra.mxu1 %v554_v37  ;;  %679 = vmatpush.msra.mxu3 %v555_v39  ;;  %v530_v60 = vld [vmem:[%s3296_s1 + $0x2b0] sm:$0xff]  ;;  %v444_v61 = vld [vmem:[%s3296_s1] sm:$0xff]  ;;  %v521_v1 = vld [vmem:[%s3296_s1 + $0x268] sm:$0xff] }
  0x20   : > { %620 = vmatpush.msra.mxu0 %v469_v40  ;;  %660 = vmatpush.msra.mxu2 %v470_v42  ;;  %v524_v62 = vld [vmem:[%s3296_s1 + $0x280] sm:$0xff]  ;;  %v601_v2 = vld [vmem:[%s3296_s1 + $0x4e8] sm:$0xff]  ;;  %v522_v7 = vld [vmem:[%s3296_s1 + $0x270] sm:$0xff] }
  0x21   : > { %640 = vmatpush.msra.mxu1 %v549_v41  ;;  %680 = vmatpush.msra.mxu3 %v550_v43  ;;  %v445_v3 = vld [vmem:[%s3296_s1 + $0x8] sm:$0xff]  ;;  %v516_v5 = vld [vmem:[%s3296_s1 + $0x240] sm:$0xff]  ;;  %v602_v8 = vld [vmem:[%s3296_s1 + $0x4f0] sm:$0xff] }
  0x22   : > { %621 = vmatpush.msra.mxu0 %v464_v44  ;;  %661 = vmatpush.msra.mxu2 %v465_v47  ;;  %v525_v4 = vld [vmem:[%s3296_s1 + $0x288] sm:$0xff]  ;;  %v596_v6 = vld [vmem:[%s3296_s1 + $0x4c0] sm:$0xff]  ;;  %v511_v9 = vld [vmem:[%s3296_s1 + $0x218] sm:$0xff] }
  0x23   : > { %641 = vmatpush.msra.mxu1 %v544_v45  ;;  %681 = vmatpush.msra.mxu3 %v545_v48  ;;  %v2689_v63 = vld.sshfl [vmem:[#allocation1] sm:$0xff pattern:$0x75316420]  ;;  %v2691_v0 = vld.sshfl [vmem:[#allocation1 + $0x8] sm:$0xff pattern:$0x75316420] }
  0x24   : > { %622 = vmatpush.msra.mxu0 %v459_v49  ;;  %662 = vmatpush.msra.mxu2 %v460_v51  ;;  %v591_v10 = vld [vmem:[%s3296_s1 + $0x498] sm:$0xff]  ;;  %v517_v11 = vld [vmem:[%s3296_s1 + $0x248] sm:$0xff]  ;;  %v506_v13 = vld [vmem:[%s3296_s1 + $0x1f0] sm:$0xff] }
  0x25   : > { %642 = vmatpush.msra.mxu1 %v539_v50  ;;  %682 = vmatpush.msra.mxu3 %v540_v52  ;;  %v597_v12 = vld [vmem:[%s3296_s1 + $0x4c8] sm:$0xff]  ;;  %v586_v14 = vld [vmem:[%s3296_s1 + $0x470] sm:$0xff]  ;;  %v512_v15 = vld [vmem:[%s3296_s1 + $0x220] sm:$0xff] }
  0x26   : > { %623 = vmatpush.msra.mxu0 %v454_v53  ;;  %663 = vmatpush.msra.mxu2 %v455_v55  ;;  %v592_v16 = vld [vmem:[%s3296_s1 + $0x4a0] sm:$0xff]  ;;  %v501_v17 = vld [vmem:[%s3296_s1 + $0x1c8] sm:$0xff]  ;;  %v507_v19 = vld [vmem:[%s3296_s1 + $0x1f8] sm:$0xff] }
  0x27   : > { %643 = vmatpush.msra.mxu1 %v534_v54  ;;  %683 = vmatpush.msra.mxu3 %v535_v56  ;;  %v581_v18 = vld [vmem:[%s3296_s1 + $0x448] sm:$0xff]  ;;  %v587_v20 = vld [vmem:[%s3296_s1 + $0x478] sm:$0xff]  ;;  %v496_v21 = vld [vmem:[%s3296_s1 + $0x1a0] sm:$0xff] }
  0x28   : > { %624 = vmatpush.msra.mxu0 %v449_v57  ;;  %664 = vmatpush.msra.mxu2 %v450_v59  ;;  %v576_v22 = vld [vmem:[%s3296_s1 + $0x420] sm:$0xff]  ;;  %v502_v23 = vld [vmem:[%s3296_s1 + $0x1d0] sm:$0xff]  ;;  %v491_v25 = vld [vmem:[%s3296_s1 + $0x178] sm:$0xff] }
  0x29   : > { %644 = vmatpush.msra.mxu1 %v529_v58  ;;  %684 = vmatpush.msra.mxu3 %v530_v60  ;;  %v582_v24 = vld [vmem:[%s3296_s1 + $0x450] sm:$0xff]  ;;  %v571_v26 = vld [vmem:[%s3296_s1 + $0x3f8] sm:$0xff]  ;;  %v497_v27 = vld [vmem:[%s3296_s1 + $0x1a8] sm:$0xff] }
  0x2a   : > { %625 = vmatpush.msra.mxu0 %v444_v61  ;;  %665 = vmatpush.msra.mxu2 %v445_v3  ;;  %v577_v28 = vld [vmem:[%s3296_s1 + $0x428] sm:$0xff]  ;;  %v486_v29 = vld [vmem:[%s3296_s1 + $0x150] sm:$0xff]  ;;  %v492_v31 = vld [vmem:[%s3296_s1 + $0x180] sm:$0xff] }
  0x2b   : > { %645 = vmatpush.msra.mxu1 %v524_v62  ;;  %626 = vmatmul.f32.vlgmr.msra.gmra.mxu0 %v2689_v63  ;;  %v566_v30 = vld [vmem:[%s3296_s1 + $0x3d0] sm:$0xff]  ;;  %v572_v32 = vld [vmem:[%s3296_s1 + $0x400] sm:$0xff]  ;;  %v481_v33 = vld [vmem:[%s3296_s1 + $0x128] sm:$0xff] }
  0x2c   : > { %646 = vmatmul.f32.vlgmr.msra.gmra.mxu1 %v2691_v0  ;;  %690 = vmatpush.msrb.mxu0 %v521_v1  ;;  %v561_v34 = vld [vmem:[%s3296_s1 + $0x3a8] sm:$0xff]  ;;  %v487_v35 = vld [vmem:[%s3296_s1 + $0x158] sm:$0xff]  ;;  %v476_v37 = vld [vmem:[%s3296_s1 + $0x100] sm:$0xff] }
  0x2d   : > { %710 = vmatpush.msrb.mxu1 %v601_v2  ;;  %685 = vmatpush.msra.mxu3 %v525_v4  ;;  %v567_v36 = vld [vmem:[%s3296_s1 + $0x3d8] sm:$0xff]  ;;  %v556_v38 = vld [vmem:[%s3296_s1 + $0x380] sm:$0xff]  ;;  %v482_v39 = vld [vmem:[%s3296_s1 + $0x130] sm:$0xff] }
  0x2e   : > { %691 = vmatpush.msrb.mxu0 %v516_v5  ;;  %730 = vmatpush.msrb.mxu2 %v522_v7  ;;  %v562_v40 = vld [vmem:[%s3296_s1 + $0x3b0] sm:$0xff]  ;;  %v471_v41 = vld [vmem:[%s3296_s1 + $0xd8] sm:$0xff]  ;;  %v477_v43 = vld [vmem:[%s3296_s1 + $0x108] sm:$0xff] }
  0x2f   : > { %711 = vmatpush.msrb.mxu1 %v596_v6  ;;  %750 = vmatpush.msrb.mxu3 %v602_v8  ;;  %v551_v42 = vld [vmem:[%s3296_s1 + $0x358] sm:$0xff]  ;;  %v557_v44 = vld [vmem:[%s3296_s1 + $0x388] sm:$0xff]  ;;  %v466_v45 = vld [vmem:[%s3296_s1 + $0xb0] sm:$0xff] }
  0x30   : > { %692 = vmatpush.msrb.mxu0 %v511_v9  ;;  %731 = vmatpush.msrb.mxu2 %v517_v11  ;;  %v546_v46 = vld [vmem:[%s3296_s1 + $0x330] sm:$0xff]  ;;  %v472_v47 = vld [vmem:[%s3296_s1 + $0xe0] sm:$0xff]  ;;  %v461_v49 = vld [vmem:[%s3296_s1 + $0x88] sm:$0xff] }
  0x31   : > { %712 = vmatpush.msrb.mxu1 %v591_v10  ;;  %751 = vmatpush.msrb.mxu3 %v597_v12  ;;  %v552_v48 = vld [vmem:[%s3296_s1 + $0x360] sm:$0xff]  ;;  %v541_v50 = vld [vmem:[%s3296_s1 + $0x308] sm:$0xff]  ;;  %v467_v51 = vld [vmem:[%s3296_s1 + $0xb8] sm:$0xff] }
  0x32   : > { %693 = vmatpush.msrb.mxu0 %v506_v13  ;;  %732 = vmatpush.msrb.mxu2 %v512_v15  ;;  %v547_v52 = vld [vmem:[%s3296_s1 + $0x338] sm:$0xff]  ;;  %v456_v53 = vld [vmem:[%s3296_s1 + $0x60] sm:$0xff]  ;;  %v462_v55 = vld [vmem:[%s3296_s1 + $0x90] sm:$0xff] }
  0x33   : > { %713 = vmatpush.msrb.mxu1 %v586_v14  ;;  %752 = vmatpush.msrb.mxu3 %v592_v16  ;;  %v536_v54 = vld [vmem:[%s3296_s1 + $0x2e0] sm:$0xff]  ;;  %v542_v56 = vld [vmem:[%s3296_s1 + $0x310] sm:$0xff]  ;;  %v451_v57 = vld [vmem:[%s3296_s1 + $0x38] sm:$0xff] }
  0x34   : > { %694 = vmatpush.msrb.mxu0 %v501_v17  ;;  %733 = vmatpush.msrb.mxu2 %v507_v19  ;;  %v531_v58 = vld [vmem:[%s3296_s1 + $0x2b8] sm:$0xff]  ;;  %v457_v59 = vld [vmem:[%s3296_s1 + $0x68] sm:$0xff]  ;;  %v446_v61 = vld [vmem:[%s3296_s1 + $0x10] sm:$0xff] }
  0x35   : > { %714 = vmatpush.msrb.mxu1 %v581_v18  ;;  %753 = vmatpush.msrb.mxu3 %v587_v20  ;;  %v537_v60 = vld [vmem:[%s3296_s1 + $0x2e8] sm:$0xff]  ;;  %v526_v62 = vld [vmem:[%s3296_s1 + $0x290] sm:$0xff]  ;;  %v452_v1 = vld [vmem:[%s3296_s1 + $0x40] sm:$0xff] }
  0x36   : > { %695 = vmatpush.msrb.mxu0 %v496_v21  ;;  %734 = vmatpush.msrb.mxu2 %v502_v23  ;;  %v532_v2 = vld [vmem:[%s3296_s1 + $0x2c0] sm:$0xff]  ;;  %v447_v3 = vld [vmem:[%s3296_s1 + $0x18] sm:$0xff]  ;;  %v518_v7 = vld [vmem:[%s3296_s1 + $0x250] sm:$0xff] }
  0x37   : > { %715 = vmatpush.msrb.mxu1 %v576_v22  ;;  %754 = vmatpush.msrb.mxu3 %v582_v24  ;;  %v527_v4 = vld [vmem:[%s3296_s1 + $0x298] sm:$0xff]  ;;  %v598_v8 = vld [vmem:[%s3296_s1 + $0x4d0] sm:$0xff]  ;;  %v513_v9 = vld [vmem:[%s3296_s1 + $0x228] sm:$0xff] }
  0x38   : > { %666 = vmatmul.f32.vlgmr.msra.gmra.mxu2 %v2689_v63  ;;  %686 = vmatmul.f32.vlgmr.msra.gmra.mxu3 %v2691_v0  ;;  %v523_v5 = vld [vmem:[%s3296_s1 + $0x278] sm:$0xff]  ;;  %v593_v10 = vld [vmem:[%s3296_s1 + $0x4a8] sm:$0xff]  ;;  %v2920_v11 = vld [vmem:[%s3297_s2] sm:$0xff] }
  0x39   : > { %696 = vmatpush.msrb.mxu0 %v491_v25  ;;  %716 = vmatpush.msrb.mxu1 %v571_v26  ;;  %v603_v6 = vld [vmem:[%s3296_s1 + $0x4f8] sm:$0xff]  ;;  %v508_v12 = vld [vmem:[%s3296_s1 + $0x200] sm:$0xff]  ;;  %v498_v16 = vld [vmem:[%s3296_s1 + $0x1b0] sm:$0xff] }
  0x3a   : > { %735 = vmatpush.msrb.mxu2 %v497_v27  ;;  %755 = vmatpush.msrb.mxu3 %v577_v28  ;;  %v588_v13 = vld [vmem:[%s3296_s1 + $0x480] sm:$0xff]  ;;  %v503_v14 = vld [vmem:[%s3296_s1 + $0x1d8] sm:$0xff]  ;;  %v578_v17 = vld [vmem:[%s3296_s1 + $0x430] sm:$0xff] }
  0x3b   : > { %697 = vmatpush.msrb.mxu0 %v486_v29  ;;  %717 = vmatpush.msrb.mxu1 %v566_v30  ;;  %v583_v15 = vld [vmem:[%s3296_s1 + $0x458] sm:$0xff]  ;;  %v493_v18 = vld [vmem:[%s3296_s1 + $0x188] sm:$0xff]  ;;  %v568_v20 = vld [vmem:[%s3296_s1 + $0x3e0] sm:$0xff] }
  0x3c   : > { %736 = vmatpush.msrb.mxu2 %v492_v31  ;;  %756 = vmatpush.msrb.mxu3 %v572_v32  ;;  %v573_v19 = vld [vmem:[%s3296_s1 + $0x408] sm:$0xff]  ;;  %v488_v21 = vld [vmem:[%s3296_s1 + $0x160] sm:$0xff]  ;;  %v483_v22 = vld [vmem:[%s3296_s1 + $0x138] sm:$0xff] }
  0x3d   : > { %698 = vmatpush.msrb.mxu0 %v481_v33  ;;  %718 = vmatpush.msrb.mxu1 %v561_v34  ;;  %v563_v23 = vld [vmem:[%s3296_s1 + $0x3b8] sm:$0xff]  ;;  %v478_v24 = vld [vmem:[%s3296_s1 + $0x110] sm:$0xff]  ;;  %v473_v26 = vld [vmem:[%s3296_s1 + $0xe8] sm:$0xff] }
  0x3e   : > { %737 = vmatpush.msrb.mxu2 %v487_v35  ;;  %757 = vmatpush.msrb.mxu3 %v567_v36  ;;  %v558_v25 = vld [vmem:[%s3296_s1 + $0x390] sm:$0xff]  ;;  %v553_v27 = vld [vmem:[%s3296_s1 + $0x368] sm:$0xff]  ;;  %v468_v28 = vld [vmem:[%s3296_s1 + $0xc0] sm:$0xff] }
  0x3f   : > { %699 = vmatpush.msrb.mxu0 %v476_v37  ;;  %719 = vmatpush.msrb.mxu1 %v556_v38  ;;  %v548_v29 = vld [vmem:[%s3296_s1 + $0x340] sm:$0xff]  ;;  %v463_v30 = vld [vmem:[%s3296_s1 + $0x98] sm:$0xff]  ;;  %v458_v35 = vld [vmem:[%s3296_s1 + $0x70] sm:$0xff] }
  0x40   : > { %738 = vmatpush.msrb.mxu2 %v482_v39  ;;  %758 = vmatpush.msrb.mxu3 %v562_v40  ;;  %v543_v31 = vld [vmem:[%s3296_s1 + $0x318] sm:$0xff]  ;;  %v538_v36 = vld [vmem:[%s3296_s1 + $0x2f0] sm:$0xff]  ;;  %v453_v37 = vld [vmem:[%s3296_s1 + $0x48] sm:$0xff] }
  0x41   : > { %700 = vmatpush.msrb.mxu0 %v471_v41  ;;  %720 = vmatpush.msrb.mxu1 %v551_v42  ;;  %v533_v38 = vld [vmem:[%s3296_s1 + $0x2c8] sm:$0xff]  ;;  %v448_v39 = vld [vmem:[%s3296_s1 + $0x20] sm:$0xff] }
  0x42   : > { %739 = vmatpush.msrb.mxu2 %v477_v43  ;;  %759 = vmatpush.msrb.mxu3 %v557_v44  ;;  %v528_v40 = vld [vmem:[%s3296_s1 + $0x2a0] sm:$0xff] }
  0x43   : > { %701 = vmatpush.msrb.mxu0 %v466_v45  ;;  %721 = vmatpush.msrb.mxu1 %v546_v46 }
  0x44   : > { %740 = vmatpush.msrb.mxu2 %v472_v47  ;;  %760 = vmatpush.msrb.mxu3 %v552_v48 }
  0x45   : > { %702 = vmatpush.msrb.mxu0 %v461_v49  ;;  %722 = vmatpush.msrb.mxu1 %v541_v50 }
  0x46   : > { %741 = vmatpush.msrb.mxu2 %v467_v51  ;;  %761 = vmatpush.msrb.mxu3 %v547_v52 }
  0x47   : > { %703 = vmatpush.msrb.mxu0 %v456_v53  ;;  %723 = vmatpush.msrb.mxu1 %v536_v54  ;;  %v443_v54 = vld [vmem:[%s3298_s3] sm:$0xff] }
  0x48   : > { %742 = vmatpush.msrb.mxu2 %v462_v55  ;;  %762 = vmatpush.msrb.mxu3 %v542_v56  ;;  %v2402_v55 = vmov 0  }
  0x49   : > { %704 = vmatpush.msrb.mxu0 %v451_v57  ;;  %724 = vmatpush.msrb.mxu1 %v531_v58 }
  0x4a   : > { %743 = vmatpush.msrb.mxu2 %v457_v59  ;;  %763 = vmatpush.msrb.mxu3 %v537_v60 }
  0x4b   : > { %705 = vmatpush.msrb.mxu0 %v446_v61  ;;  %725 = vmatpush.msrb.mxu1 %v526_v62 }
  0x4c   : > { %744 = vmatpush.msrb.mxu2 %v452_v1  ;;  %764 = vmatpush.msrb.mxu3 %v532_v2 }
  0x4d   : > { %706 = vmatmul.f32.vlgmr.msrb.gmra.mxu0 %v2689_v63  ;;  %726 = vmatmul.f32.vlgmr.msrb.gmra.mxu1 %v2691_v0 }
  0x4e   : > { %745 = vmatpush.msrb.mxu2 %v447_v3  ;;  %765 = vmatpush.msrb.mxu3 %v527_v4  ;;  %v1090_v3 = vld [vmem:[%s3299_s4 + $0x70] sm:$0xff]  ;;  %v1091_v4 = vld [vmem:[%s3299_s4 + $0x78] sm:$0xff] }
  0x4f   : > { %746 = vmatmul.f32.vlgmr.msrb.gmra.mxu2 %v2689_v63  ;;  %766 = vmatmul.f32.vlgmr.msrb.gmra.mxu3 %v2691_v0 }
  0x50   : > { %770 = vmatpush.msra.mxu0 %v523_v5  ;;  %790 = vmatpush.msra.mxu1 %v603_v6  ;;  %v1088_v5 = vld [vmem:[%s3299_s4 + $0x60] sm:$0xff]  ;;  %v1089_v6 = vld [vmem:[%s3299_s4 + $0x68] sm:$0xff] }
  0x51   : > { %866 = vrot.lane.b32.xlu1 %v2920_v11, %s2393_s15  ;;  %894 = vrot.lane.b32.xlu2 %v2920_v11, %s2394_s17  ;;  %s2407_s17 = smov 48  }
  0x52   : > { %771 = vmatpush.msra.mxu0 %v518_v7  ;;  %791 = vmatpush.msra.mxu1 %v598_v8  ;;  %v1086_v7 = vld [vmem:[%s3299_s4 + $0x50] sm:$0xff]  ;;  %v1087_v8 = vld [vmem:[%s3299_s4 + $0x58] sm:$0xff] }
  0x53   : > { %2367 = vset.pattern.permute.xlu0 %v2402_v55  ;;  %2369 = vset.pattern.permute.xlu2 %v2402_v55 }
  0x54   : > { %772 = vmatpush.msra.mxu0 %v513_v9  ;;  %792 = vmatpush.msra.mxu1 %v593_v10  ;;  %v1084_v9 = vld [vmem:[%s3299_s4 + $0x40] sm:$0xff]  ;;  %v1085_v10 = vld [vmem:[%s3299_s4 + $0x48] sm:$0xff] }
  0x55   : > { %2368 = vset.pattern.permute.xlu1 %v2402_v55 }
  0x56   : > { %773 = vmatpush.msra.mxu0 %v508_v12  ;;  %793 = vmatpush.msra.mxu1 %v588_v13  ;;  %v1082_v12 = vld [vmem:[%s3299_s4 + $0x30] sm:$0xff]  ;;  %v1083_v13 = vld [vmem:[%s3299_s4 + $0x38] sm:$0xff] }
  0x58   : > { %774 = vmatpush.msra.mxu0 %v503_v14  ;;  %794 = vmatpush.msra.mxu1 %v583_v15  ;;  %v1080_v14 = vld [vmem:[%s3299_s4 + $0x20] sm:$0xff]  ;;  %v1081_v15 = vld [vmem:[%s3299_s4 + $0x28] sm:$0xff] }
  0x59   : > { %923 = vrot.lane.b32.xlu2 %v2920_v11, %s2395_s14 }
  0x5a   : > { %775 = vmatpush.msra.mxu0 %v498_v16  ;;  %795 = vmatpush.msra.mxu1 %v578_v17  ;;  %v1078_v16 = vld [vmem:[%s3299_s4 + $0x10] sm:$0xff]  ;;  %v1079_v17 = vld [vmem:[%s3299_s4 + $0x18] sm:$0xff] }
  0x5c   : > { %776 = vmatpush.msra.mxu0 %v493_v18  ;;  %796 = vmatpush.msra.mxu1 %v573_v19  ;;  %v1076_v19 = vld [vmem:[%s3299_s4] sm:$0xff] }
  0x5e   : > { %797 = vmatpush.msra.mxu1 %v568_v20  ;;  %777 = vmatpush.msra.mxu0 %v488_v21  ;;  %v1077_v20 = vld [vmem:[%s3299_s4 + $0x8] sm:$0xff]  ;;  %v1072_v21 = vld [vmem:[%s3300_s5] sm:$0xff] }
  0x60   : > { %778 = vmatpush.msra.mxu0 %v483_v22  ;;  %798 = vmatpush.msra.mxu1 %v563_v23  ;;  %v1073_v22 = vld [vmem:[%s3300_s5 + $0x8] sm:$0xff] }
  0x61   : > { %980 = vrot.lane.b32.xlu2 %v2920_v11, %s2396_s22 }
  0x62   : > { %779 = vmatpush.msra.mxu0 %v478_v24  ;;  %799 = vmatpush.msra.mxu1 %v558_v25 }
  0x64   : > { %780 = vmatpush.msra.mxu0 %v473_v26  ;;  %800 = vmatpush.msra.mxu1 %v553_v27 }
  0x66   : > { %781 = vmatpush.msra.mxu0 %v468_v28  ;;  %801 = vmatpush.msra.mxu1 %v548_v29 }
  0x68   : > { %782 = vmatpush.msra.mxu0 %v463_v30  ;;  %802 = vmatpush.msra.mxu1 %v543_v31 }
  0x69   : > { %1037 = vrot.lane.b32.xlu2 %v2920_v11, %s2397_s23 }
  0x6a   : > { %783 = vmatpush.msra.mxu0 %v458_v35  ;;  %803 = vmatpush.msra.mxu1 %v538_v36 }
  0x6c   : > { %784 = vmatpush.msra.mxu0 %v453_v37  ;;  %804 = vmatpush.msra.mxu1 %v533_v38 }
  0x6e   : > { %785 = vmatpush.msra.mxu0 %v448_v39  ;;  %805 = vmatpush.msra.mxu1 %v528_v40 }
  0x6f   : > { %786 = vmatmul.f32.vlgmr.msra.gmra.mxu0 %v2689_v63  ;;  %806 = vmatmul.f32.vlgmr.msra.gmra.mxu1 %v2691_v0 }
  0x70   : > { %1104 = vmatpush.msrb.mxu1 %v1090_v3  ;;  %v3148_v3 = vld [vmem:[%s3306_s11] sm:$0xff] }
  0x71   : > { %1138 = vrot.lane.b32.xlu2 %v1072_v21, %s2393_s15 }
  0x72   : > { %1105 = vmatpush.msrb.mxu1 %v1088_v5  ;;  %v2073_v5 = vrot.slane %v3148_v3, 4 }
  0x74   : > { %1106 = vmatpush.msrb.mxu1 %v1086_v7 }
  0x76   : > { %1107 = vmatpush.msrb.mxu1 %v1084_v9  ;;  %v1768_v9 = vld [vmem:[%s3307_s12 + $0x8] sm:$0xff] }
  0x78   : > { %1108 = vmatpush.msrb.mxu1 %v1082_v12  ;;  %v1473_v12 = vld [vmem:[%s3302_s7 + $0x8] sm:$0xff] }
  0x79   : > { %1273 = vrot.lane.b32.xlu2 %v1072_v21, %s2397_s23 }
  0x7a   : > { %1109 = vmatpush.msrb.mxu1 %v1080_v14  ;;  %v1472_v14 = vld [vmem:[%s3302_s7] sm:$0xff] }
  0x7c   : > { %1110 = vmatpush.msrb.mxu1 %v1078_v16 }
  0x7e   : > { %1111 = vmatpush.msrb.mxu1 %v1076_v19 }
  0x81   : > { %1239 = vrot.lane.b32.xlu2 %v1073_v22, %s2396_s22 }
  0xa8   : > { %v627_v32 = vpop.f32.mrf.mxu0 }
  0xa9   : > { %v647_v33 = vpop.f32.mrf.mxu1 }
  0xaa   : > { %v648_v34 = vadd.f32 %v647_v33, %v627_v32 }
  0xab   : > { %v895_v48 = vpop.permute.xlu2 %894 }
  0xac   : > { %814 = vrot.lane.b32.xlu0 %v648_v34, %s2398_s21  ;;  %2275 = vmatpush.msk.msra.mxu3 %vm819_vm0, %v648_v34 }
  0xad   : > { %2276 = vmatmul.msk.f32.vlgmr.msra.gmra.mxu3 %vm816_vm1, %v2920_v11 }
  0xb3   : > { %v924_v50 = vpop.permute.xlu2 %923 }
  0xb4   : > { %811 = vrot.lane.b32.xlu0 %v2920_v11, %s2399_s27 }
  0xbb   : > { %v667_v41 = vpop.f32.mrf.mxu2  ;;  %v687_v42 = vpop.f32.mrf.mxu3 }
  0xbc   : > { %v688_v43 = vadd.f32 %v687_v42, %v667_v41  ;;  %v981_v53 = vpop.permute.xlu2 %980 }
  0xbe   : > { %896 = vrot.lane.b32.xlu1 %v688_v43, %s2398_s21 }
  0xc3   : > { %v867_v52 = vpop.permute.xlu1 %866 }
  0xc4   : > { %v1038_v59 = vpop.permute.xlu2 %1037 }
  0xc6   : > { %951 = vrot.lane.b32.xlu1 %v2920_v11, %s2400_s28  ;;  %s2403_s28 = smov 80  }
  0xca   : > { %v707_v44 = vpop.f32.mrf.mxu0  ;;  %v727_v45 = vpop.f32.mrf.mxu1 }
  0xcb   : > { %v728_v46 = vadd.f32 %v727_v45, %v707_v44 }
  0xcc   : > { %v1139_v42 = vpop.permute.xlu2 %1138 }
  0xcd   : > { %953 = vrot.lane.b32.xlu0 %v728_v46, %s2398_s21 }
  0xce   : > { %1008 = vrot.lane.b32.xlu1 %v2920_v11, %s2401_s29  ;;  %s2404_s29 = smov 88  }
  0xd2   : > { %v747_v63 = vpop.f32.mrf.mxu2  ;;  %v767_v0 = vpop.f32.mrf.mxu3 }
  0xd3   : > { %v768_v47 = vadd.f32 %v767_v0, %v747_v63 }
  0xd5   : > { %1010 = vrot.lane.b32.xlu0 %v768_v47, %s2398_s21 }
  0xd6   : > { %1140 = vrot.lane.b32.xlu1 %v1073_v22, %s2393_s15 }
  0xdd   : > { %1067 = vperm.xlu0 %2367, %v443_v54   ;;  %v3124_v54 = vld [vmem:[%s3303_s8] sm:$0xff] }
  0xe5   : > { %1237 = vrot.lane.b32.xlu0 %v1072_v21, %s2396_s22 }
  0xec   : > { %v787_v56 = vpop.f32.mrf.mxu0  ;;  %v807_v57 = vpop.f32.mrf.mxu1 }
  0xed   : > { %v808_v58 = vadd.f32 %v807_v57, %v787_v56  ;;  %1275 = vrot.lane.b32.xlu0 %v1073_v22, %s2397_s23 }
  0xef   : > { %2289 = vmatpush.msk.msrb.mxu0 %vm819_vm0, %v808_v58  ;;  %v1074_v58 = vld [vmem:[%s3301_s6] sm:$0xff] }
  0xf0   : > { %2290 = vmatmul.msk.f32.vlgmr.msrb.gmra.mxu0 %vm816_vm1, %v1038_v59 }
 0x11e   : > { %v815_v49 = vpop.permute.xlu0 %814 }
 0x11f   : > { %2273 = vmatpush.msk.msra.mxu2 %vm819_vm0, %v815_v49 }
 0x121   : > { %2277 = vmatpush.msk.msrb.mxu2 %vm819_vm0, %v688_v43  ;;  %v1274_v43 = vpop.permute.xlu2 %1273 }
 0x126   : > { %v812_v51 = vpop.permute.xlu0 %811 }
 0x127   : > { %2274 = vmatmul.msk.f32.vlgmr.msra.gmra.mxu2 %vm816_vm1, %v812_v51  ;;  %v1075_v51 = vld [vmem:[%s3301_s6 + $0x8] sm:$0xff] }
 0x128   : > { %2281 = vmatpush.msk.msra.mxu2 %vm819_vm0, %v728_v46 }
 0x129   : > { %v1240_v44 = vpop.permute.xlu2 %1239 }
 0x12f   : > { %2278 = vmatmul.msk.f32.vlgmr.msrb.gmra.mxu2 %vm816_vm1, %v867_v52 }
 0x130   : > { %2285 = vmatpush.msk.msrb.mxu2 %vm819_vm0, %v768_v47  ;;  %v897_v60 = vpop.permute.xlu1 %896  ;;  %v863_v18 = vpop.f32.mrf.mxu3 }
 0x131   : > { %2279 = vmatpush.msk.msrb.mxu3 %vm819_vm0, %v897_v60 }
 0x132   : > { %2280 = vmatmul.msk.f32.vlgmr.msrb.gmra.mxu3 %vm816_vm1, %v895_v48 }
 0x137   : > { %2282 = vmatmul.msk.f32.vlgmr.msra.gmra.mxu2 %vm816_vm1, %v924_v50 }
 0x138   : > { %v952_v61 = vpop.permute.xlu1 %951  ;;  %1124 = vmatpush.msra.mxu2 %v1091_v4 }
 0x13a   : > { %1125 = vmatpush.msra.mxu2 %v1089_v6 }
 0x13c   : > { %1126 = vmatpush.msra.mxu2 %v1087_v8 }
 0x13e   : > { %1127 = vmatpush.msra.mxu2 %v1085_v10 }
 0x13f   : > { %2286 = vmatmul.msk.f32.vlgmr.msrb.gmra.mxu2 %vm816_vm1, %v981_v53  ;;  %v954_v62 = vpop.permute.xlu0 %953 }
 0x140   : > { %2283 = vmatpush.msk.msra.mxu3 %vm819_vm0, %v954_v62  ;;  %v1009_v1 = vpop.permute.xlu1 %1008  ;;  %1128 = vmatpush.msra.mxu2 %v1083_v13 }
 0x141   : > { %2284 = vmatmul.msk.f32.vlgmr.msra.gmra.mxu3 %vm816_vm1, %v952_v61  ;;  %v1469_v61 = vld [vmem:[%s3304_s9 + $0x8] sm:$0xff] }
 0x142   : > { %1129 = vmatpush.msra.mxu2 %v1081_v15 }
 0x144   : > { %1130 = vmatpush.msra.mxu2 %v1079_v17 }
 0x146   : > { %1131 = vmatpush.msra.mxu2 %v1077_v20 }
 0x147   : > { %v1011_v2 = vpop.permute.xlu0 %1010 }
 0x148   : > { %2287 = vmatpush.msk.msrb.mxu3 %vm819_vm0, %v1011_v2  ;;  %v1141_v47 = vpop.permute.xlu1 %1140  ;;  %v1471_v2 = vld [vmem:[%s3304_s9 + $0x18] sm:$0xff] }
 0x149   : > { %2288 = vmatmul.msk.f32.vlgmr.msrb.gmra.mxu3 %vm816_vm1, %v1009_v1 }
 0x14f   : > { %v1068_v37 = vpop.permute.xlu0 %1067 }
 0x157   : > { %v1238_v46 = vpop.permute.xlu0 %1237 }
 0x15f   : > { %v1276_v0 = vpop.permute.xlu0 %1275 }
 0x16d   : > { %v1061_v35 = vpop.f32.mrf.mxu0 }
 0x1aa   : > { %v839_v11 = vpop.f32.mrf.mxu2 }
 0x1ab   : > { %v864_v24 = vadd.f32 %v863_v18, %v839_v11 }
 0x1b2   : > { %v890_v23 = vpop.f32.mrf.mxu2 }
 0x1b3   : > { %v893_v26 = vadd.f32 %v890_v23, %v864_v24 }
 0x1b5   : > { %v919_v25 = vpop.f32.mrf.mxu3 }
 0x1b6   : > { %v922_v28 = vadd.f32 %v919_v25, %v893_v26 }
 0x1ba   : > { %v947_v27 = vpop.f32.mrf.mxu2 }
 0x1bb   : > { %v950_v30 = vadd.f32 %v947_v27, %v922_v28 }
 0x1c2   : > { %v1004_v32 = vpop.f32.mrf.mxu2 }
 0x1c4   : > { %v976_v29 = vpop.f32.mrf.mxu3 }
 0x1c5   : > { %v979_v31 = vadd.f32 %v976_v29, %v950_v30 }
 0x1c7   : > { %v1007_v33 = vadd.f32 %v1004_v32, %v979_v31 }
 0x1cc   : > { %v1033_v34 = vpop.f32.mrf.mxu3 }
 0x1cd   : > { %v1036_v36 = vadd.f32 %v1033_v34, %v1007_v33 }
 0x1cf   : > { %v1064_v38 = vadd.f32 %v1061_v35, %v1036_v36 }
 0x1d1   : > { %v1070_v39 = vadd.f32 %v1068_v37, %v1064_v38 }
 0x1d3   : > { %v1071_v40 = vmax.f32 %v1070_v39, 0.0 }
 0x1d5   : > { %2291 = vmatmul.msk.f32.vlgmr.msrb.gmra.mxu1 %vm1092_vm2, %v1071_v40  ;;  %2292 = vmatmul.msk.f32.vlgmr.msra.gmra.mxu2 %vm1092_vm2, %v1071_v40 }
 0x252   : > { %v1113_v41 = vpop.f32.mrf.mxu1 }
 0x253   : > { %1205 = vrot.lane.b32.xlu0 %v1113_v41, %s2397_s23  ;;  %1241 = vrot.lane.b32.xlu2 %v1113_v41, %s2403_s28 }
 0x254   : > { %1143 = vrot.lane.b32.xlu1 %v1113_v41, %s2395_s14  ;;  %1193 = vmatpush.msra.mxu0 %v1113_v41 }
 0x255   : > { %2295 = vmatmul.msk.f32.vlgmr.msra.gmra.mxu0 %vm1146_vm3, %v1072_v21 }
 0x258   : > { %v1133_v57 = vpop.f32.mrf.mxu2 }
 0x25b   : > { %1309 = vrot.lane.b32.xlu2 %v1072_v21, %s2404_s29  ;;  %1381 = vrot.lane.b32.xlu0 %v1072_v21, %s2405_s30 }
 0x25c   : > { %1201 = vrot.lane.b32.xlu1 %v1072_v21, %s2395_s14 }
 0x25d   : > { %2296 = vmatmul.msk.f32.gmra.mxu0 %vm1146_vm3, %v1073_v22 }
 0x263   : > { %1385 = vrot.lane.b32.xlu2 %v1113_v41, %s2406_s20  ;;  %1417 = vrot.lane.b32.xlu0 %v1072_v21, %s2398_s21 }
 0x264   : > { %1277 = vrot.lane.b32.xlu1 %v1113_v41, %s2398_s21 }
 0x26b   : > { %1383 = vrot.lane.b32.xlu0 %v1073_v22, %s2405_s30  ;;  %1345 = vrot.lane.b32.xlu2 %v1072_v21, %s2403_s28 }
 0x26c   : > { %1203 = vrot.lane.b32.xlu1 %v1073_v22, %s2395_s14 }
 0x273   : > { %1347 = vrot.lane.b32.xlu0 %v1073_v22, %s2403_s28  ;;  %1419 = vrot.lane.b32.xlu2 %v1073_v22, %s2398_s21 }
 0x274   : > { %1313 = vrot.lane.b32.xlu1 %v1113_v41, %s2407_s17 }
 0x27b   : > { %1457 = vperm.xlu2 %2369, %v1075_v51  }
 0x27c   : > { %1349 = vrot.lane.b32.xlu1 %v1113_v41, %s2408_s18 }
 0x283   : > { %1505 = vrot.lane.b32.xlu2 %v3124_v54, %s2395_s14 }
 0x284   : > { %1311 = vrot.lane.b32.xlu1 %v1073_v22, %s2404_s29 }
 0x28b   : > { %1590 = vrot.lane.b32.xlu2 %v3124_v54, %s2403_s28 }
 0x28c   : > { %1452 = vperm.xlu1 %2368, %v1074_v58  }
 0x293   : > { %1677 = vperm.xlu2 %2369, %v1469_v61  }
 0x29b   : > { %1738 = vperm.xlu2 %2369, %v1471_v2  }
 0x2a3   : > { %2074 = vrot.lane.b32.xlu2 %v2073_v5, %s2395_s14 }
 0x2ab   : > { %2037 = vrot.lane.b32.xlu2 %v3148_v3, %s2396_s22 }
 0x2ad   : > { %v1242_v45 = vpop.permute.xlu2 %1241 }
 0x2ae   : > { %1263 = vmatpush.msrb.mxu2 %v1242_v45 }
 0x2af   : > { %2299 = vmatmul.msk.f32.vlgmr.msrb.gmra.mxu2 %vm1146_vm3, %v1238_v46 }
 0x2b3   : > { %2173 = vperm.xlu2 %2369, %v1768_v9  }
 0x2b5   : > { %v1310_v63 = vpop.permute.xlu2 %1309 }
 0x2b7   : > { %2300 = vmatmul.msk.f32.gmra.mxu2 %vm1146_vm3, %v1240_v44 }
 0x2bd   : > { %v1386_v48 = vpop.permute.xlu2 %1385 }
 0x2be   : > { %1407 = vmatpush.msra.mxu2 %v1386_v48 }
 0x2c5   : > { %v1206_v49 = vpop.permute.xlu0 %1205  ;;  %v1346_v62 = vpop.permute.xlu2 %1345 }
 0x2c6   : > { %v1144_v50 = vpop.permute.xlu1 %1143  ;;  %1227 = vmatpush.msra.mxu1 %v1206_v49 }
 0x2c7   : > { %1166 = vmatpush.msra.mxu3 %v1144_v50 }
 0x2c8   : > { %2293 = vmatmul.msk.f32.vlgmr.msra.gmra.mxu3 %vm1146_vm3, %v1139_v42 }
 0x2cd   : > { %v1382_v52 = vpop.permute.xlu0 %1381  ;;  %v1420_v4 = vpop.permute.xlu2 %1419 }
 0x2ce   : > { %v1202_v53 = vpop.permute.xlu1 %1201  ;;  %2307 = vmatmul.msk.f32.vlgmr.msra.gmra.mxu2 %vm1146_vm3, %v1382_v52 }
 0x2cf   : > { %2297 = vmatmul.msk.f32.vlgmr.msra.gmra.mxu1 %vm1146_vm3, %v1202_v53  ;;  %v1465_v53 = vld [vmem:[%s3303_s8 + $0x8] sm:$0xff] }
 0x2d0   : > { %2294 = vmatmul.msk.f32.gmra.mxu3 %vm1146_vm3, %v1141_v47 }
 0x2d2   : > { %v1195_v13 = vpop.f32.mrf.mxu0 }
 0x2d5   : > { %v1418_v55 = vpop.permute.xlu0 %1417  ;;  %v1458_v47 = vpop.permute.xlu2 %1457 }
 0x2d6   : > { %v1278_v56 = vpop.permute.xlu1 %1277 }
 0x2d7   : > { %1299 = vmatpush.msrb.mxu3 %v1278_v56  ;;  %v1470_v56 = vld [vmem:[%s3304_s9 + $0x10] sm:$0xff] }
 0x2d8   : > { %2301 = vmatmul.msk.f32.vlgmr.msrb.gmra.mxu3 %vm1146_vm3, %v1274_v43 }
 0x2d9   : > { %1440 = vmatpush.msra.mxu3 %v1133_v57  ;;  %v1767_v57 = vld [vmem:[%s3307_s12] sm:$0xff] }
 0x2da   : > { %v1198_v19 = vpop.f32.mrf.mxu0 }
 0x2dd   : > { %v1384_v59 = vpop.permute.xlu0 %1383  ;;  %v1506_v2 = vpop.permute.xlu2 %1505 }
 0x2de   : > { %v1204_v60 = vpop.permute.xlu1 %1203  ;;  %2308 = vmatmul.msk.f32.gmra.mxu2 %vm1146_vm3, %v1384_v59 }
 0x2df   : > { %2298 = vmatmul.msk.f32.gmra.mxu1 %vm1146_vm3, %v1204_v60 }
 0x2e0   : > { %2302 = vmatmul.msk.f32.gmra.mxu3 %vm1146_vm3, %v1276_v0 }
 0x2e5   : > { %v1348_v7 = vpop.permute.xlu0 %1347  ;;  %v1591_v9 = vpop.permute.xlu2 %1590 }
 0x2e6   : > { %v1314_v1 = vpop.permute.xlu1 %1313 }
 0x2e7   : > { %1335 = vmatpush.msrb.mxu0 %v1314_v1 }
 0x2e8   : > { %2303 = vmatmul.msk.f32.vlgmr.msrb.gmra.mxu0 %vm1146_vm3, %v1310_v63  ;;  %2309 = vmatmul.msk.f32.vlgmr.msra.gmra.mxu3 %vm1146_vm3, %v1418_v55  ;;  %v1466_v55 = vld [vmem:[%s3303_s8 + $0x10] sm:$0xff] }
 0x2e9   : > { %1495 = vmatpush.msra.mxu0 %v1473_v12  ;;  %v1467_v12 = vld [vmem:[%s3303_s8 + $0x18] sm:$0xff] }
 0x2eb   : > { %1496 = vmatpush.msra.mxu0 %v1472_v14  ;;  %v1776_v14 = vld [vmem:[%s3305_s10 + $0x38] sm:$0xff] }
 0x2ee   : > { %v1350_v6 = vpop.permute.xlu1 %1349 }
 0x2ef   : > { %1371 = vmatpush.msrb.mxu1 %v1350_v6 }
 0x2f0   : > { %2305 = vmatmul.msk.f32.vlgmr.msrb.gmra.mxu1 %vm1146_vm3, %v1346_v62  ;;  %2310 = vmatmul.msk.f32.gmra.mxu3 %vm1146_vm3, %v1420_v4 }
 0x2f6   : > { %v1312_v8 = vpop.permute.xlu1 %1311 }
 0x2f7   : > { %2304 = vmatmul.msk.f32.gmra.mxu0 %vm1146_vm3, %v1312_v8 }
 0x2f8   : > { %2306 = vmatmul.msk.f32.gmra.mxu1 %vm1146_vm3, %v1348_v7 }
 0x2fe   : > { %v1453_v36 = vpop.permute.xlu1 %1452 }
 0x332   : > { %v1265_v17 = vpop.f32.mrf.mxu2 }
 0x33a   : > { %v1268_v23 = vpop.f32.mrf.mxu2 }
 0x34b   : > { %v1168_v10 = vpop.f32.mrf.mxu3 }
 0x34c   : > { %v1229_v16 = vpop.f32.mrf.mxu1  ;;  %v1196_v18 = vadd.f32 %v1195_v13, %v1168_v10  ;;  %v1775_v13 = vld [vmem:[%s3305_s10 + $0x30] sm:$0xff] }
 0x34e   : > { %v1235_v20 = vadd.f32 %v1229_v16, %v1196_v18  ;;  %v1772_v16 = vld [vmem:[%s3305_s10 + $0x18] sm:$0xff]  ;;  %v1774_v18 = vld [vmem:[%s3305_s10 + $0x28] sm:$0xff] }
 0x350   : > { %v1271_v24 = vadd.f32 %v1265_v17, %v1235_v20  ;;  %v1773_v17 = vld [vmem:[%s3305_s10 + $0x20] sm:$0xff]  ;;  %v1770_v20 = vld [vmem:[%s3305_s10 + $0x8] sm:$0xff] }
 0x351   : > { %v1409_v32 = vpop.f32.mrf.mxu2 }
 0x353   : > { %v1171_v11 = vpop.f32.mrf.mxu3 }
 0x354   : > { %v1199_v27 = vadd.f32 %v1198_v19, %v1171_v11  ;;  %v1769_v19 = vld [vmem:[%s3305_s10] sm:$0xff] }
 0x35b   : > { %v1301_v15 = vpop.f32.mrf.mxu3 }
 0x35c   : > { %v1232_v21 = vpop.f32.mrf.mxu1  ;;  %v1307_v26 = vadd.f32 %v1301_v15, %v1271_v24  ;;  %v1771_v15 = vld [vmem:[%s3305_s10 + $0x10] sm:$0xff]  ;;  %v1915_v24 = vld [vmem:[%s3305_s10 + $0x78] sm:$0xff] }
 0x35d   : > { %v1236_v29 = vadd.f32 %v1232_v21, %v1199_v27  ;;  %v1865_v21 = vld [vmem:[%s3305_s10 + $0x50] sm:$0xff]  ;;  %v1912_v27 = vld [vmem:[%s3305_s10 + $0x60] sm:$0xff] }
 0x35f   : > { %v1272_v35 = vadd.f32 %v1268_v23, %v1236_v29  ;;  %v1914_v23 = vld [vmem:[%s3305_s10 + $0x70] sm:$0xff] }
 0x361   : > { %v1412_v45 = vpop.f32.mrf.mxu2 }
 0x363   : > { %v1304_v22 = vpop.f32.mrf.mxu3 }
 0x364   : > { %v1308_v38 = vadd.f32 %v1304_v22, %v1272_v35  ;;  %v1866_v22 = vld [vmem:[%s3305_s10 + $0x58] sm:$0xff]  ;;  %v1678_v35 = vpop.permute.xlu2 %1677 }
 0x365   : > { %v1337_v25 = vpop.f32.mrf.mxu0 }
 0x366   : > { %v1343_v28 = vadd.f32 %v1337_v25, %v1307_v26  ;;  %v1863_v25 = vld [vmem:[%s3305_s10 + $0x40] sm:$0xff]  ;;  %v1864_v26 = vld [vmem:[%s3305_s10 + $0x48] sm:$0xff] }
 0x36b   : > { %v1442_v34 = vpop.f32.mrf.mxu3 }
 0x36d   : > { %v1373_v30 = vpop.f32.mrf.mxu1 }
 0x36e   : > { %v1379_v31 = vadd.f32 %v1373_v30, %v1343_v28  ;;  %v1913_v28 = vld [vmem:[%s3305_s10 + $0x68] sm:$0xff] }
 0x370   : > { %v1415_v33 = vadd.f32 %v1409_v32, %v1379_v31 }
 0x372   : > { %v1448_v37 = vadd.f32 %v1442_v34, %v1415_v33 }
 0x373   : > { %v1445_v46 = vpop.f32.mrf.mxu3 }
 0x374   : > { %v1460_v39 = vadd.f32 %v1453_v36, %v1448_v37  ;;  %v1340_v40 = vpop.f32.mrf.mxu0 }
 0x375   : > { %v1344_v41 = vadd.f32 %v1340_v40, %v1308_v38  ;;  %v1376_v42 = vpop.f32.mrf.mxu1 }
 0x376   : > { %v1462_v43 = vmax.f32 %v1460_v39, 0.0 }
 0x377   : > { %v1380_v44 = vadd.f32 %v1376_v42, %v1344_v41 }
 0x378   : > { %2311 = vmatmul.msk.f32.vlgmr.msra.gmra.mxu0 %vm1474_vm4, %v1462_v43 }
 0x379   : > { %v1416_v63 = vadd.f32 %v1412_v45, %v1380_v44 }
 0x37b   : > { %v1449_v0 = vadd.f32 %v1445_v46, %v1416_v63 }
 0x37d   : > { %v1461_v48 = vadd.f32 %v1458_v47, %v1449_v0 }
 0x37f   : > { %v1463_v49 = vmax.f32 %v1461_v48, 0.0  ;;  %v1739_v48 = vpop.permute.xlu2 %1738 }
 0x381   : > { %2312 = vmatmul.msk.f32.gmra.mxu0 %vm1474_vm4, %v1463_v49 }
 0x3f5   : > { %v1498_v50 = vpop.f32.mrf.mxu0 }
 0x3fe   : > { %v1501_v51 = vpop.f32.mrf.mxu0 }
 0x3ff   : > { %1553 = vmatpush.msrb.mxu2 %v1501_v51  ;;  %v2375_v52 = vpack.i.bf16 %v1498_v50, %v1501_v51 }
 0x401   : > { %2376 = vrot.lane.b32.xlu1 %v2375_v52, %s2397_s23  ;;  %2371 = vrot.lane.b32.xlu0 %v2375_v52, %s2395_s14 }
 0x402   : > { %1554 = vmatpush.msrb.mxu2 %v1498_v50 }
 0x403   : > { %2314 = vmatmul.msk.f32.vlgmr.msrb.gmra.mxu2 %vm1474_vm4, %v3124_v54 }
 0x404   : > { %1669 = vmatpush.msra.mxu2 %v1501_v51 }
 0x406   : > { %1670 = vmatpush.msra.mxu2 %v1498_v50 }
 0x408   : > { %1794 = vmatpush.msrb.mxu2 %v1775_v13 }
 0x409   : > { %2381 = vrot.lane.b32.xlu1 %v2375_v52, %s2403_s28  ;;  %1559 = vrot.lane.b32.xlu0 %v3124_v54, %s2397_s23  ;;  %v1468_v54 = vld [vmem:[%s3304_s9] sm:$0xff] }
 0x40a   : > { %1795 = vmatpush.msrb.mxu2 %v1773_v17 }
 0x40b   : > { %2318 = vmatmul.msk.f32.vlgmr.msra.gmra.mxu2 %vm1474_vm4, %v1465_v53 }
 0x40c   : > { %1884 = vmatpush.msra.mxu2 %v1865_v21 }
 0x40e   : > { %1885 = vmatpush.msra.mxu2 %v1863_v25 }
 0x411   : > { %1683 = vrot.lane.b32.xlu1 %v1466_v55, %s2395_s14  ;;  %1629 = vrot.lane.b32.xlu0 %v1465_v53, %s2397_s23 }
 0x419   : > { %1731 = vperm.xlu1 %2368, %v1470_v56   ;;  %1623 = vperm.xlu0 %2367, %v1468_v54  }
 0x421   : > { %1962 = vrot.lane.b32.xlu1 %v3148_v3, %s2393_s15 }
 0x429   : > { %2012 = vrot.lane.b32.xlu1 %v3148_v3, %s2395_s14 }
 0x431   : > { %2068 = vperm.xlu1 %2368, %v1767_v57  }
 0x473   : > { %v2377_v58 = vpop.permute.xlu1 %2376  ;;  %v2372_v59 = vpop.permute.xlu0 %2371 }
 0x474   : > { %v2378_v60 = vunpack.i.l.bf16 %v2377_v58  ;;  %v2373_v61 = vunpack.i.l.bf16 %v2372_v59  ;;  %v2379_v62 = vunpack.i.h.bf16 %v2377_v58  ;;  %v2374_v1 = vunpack.i.h.bf16 %v2372_v59 }
 0x476   : > { %1531 = vmatpush.msra.mxu1 %v2373_v61  ;;  %1583 = vmatpush.msrb.mxu3 %v2378_v60 }
 0x478   : > { %1532 = vmatpush.msra.mxu1 %v2374_v1  ;;  %1584 = vmatpush.msrb.mxu3 %v2379_v62 }
 0x479   : > { %2313 = vmatmul.msk.f32.vlgmr.msra.gmra.mxu1 %vm1474_vm4, %v1506_v2 }
 0x47a   : > { %1647 = vmatpush.msrb.mxu1 %v2378_v60  ;;  %1701 = vmatpush.msra.mxu3 %v2373_v61 }
 0x47b   : > { %v2382_v4 = vpop.permute.xlu1 %2381  ;;  %v1560_v6 = vpop.permute.xlu0 %1559 }
 0x47c   : > { %1648 = vmatpush.msrb.mxu1 %v2379_v62  ;;  %1702 = vmatpush.msra.mxu3 %v2374_v1  ;;  %v2383_v7 = vunpack.i.l.bf16 %v2382_v4  ;;  %v2384_v8 = vunpack.i.h.bf16 %v2382_v4 }
 0x47d   : > { %2315 = vmatmul.msk.f32.vlgmr.msrb.gmra.mxu3 %vm1474_vm4, %v1560_v6 }
 0x47e   : > { %1758 = vmatpush.msra.mxu1 %v1501_v51  ;;  %1614 = vmatpush.msrb.mxu0 %v2383_v7 }
 0x47f   : > { %1814 = vmatpush.msrb.mxu3 %v1776_v14 }
 0x480   : > { %1759 = vmatpush.msra.mxu1 %v1498_v50  ;;  %1615 = vmatpush.msrb.mxu0 %v2384_v8 }
 0x481   : > { %2316 = vmatmul.msk.f32.vlgmr.msrb.gmra.mxu0 %vm1474_vm4, %v1591_v9  ;;  %1815 = vmatpush.msrb.mxu3 %v1774_v18  ;;  %v1766_v9 = vld [vmem:[%s3306_s11 + $0x8] sm:$0xff] }
 0x482   : > { %1723 = vmatpush.msra.mxu0 %v1501_v51 }
 0x483   : > { %v1684_v10 = vpop.permute.xlu1 %1683  ;;  %v1630_v11 = vpop.permute.xlu0 %1629 }
 0x484   : > { %1724 = vmatpush.msra.mxu0 %v1498_v50  ;;  %2317 = vmatmul.msk.f32.vlgmr.msrb.gmra.mxu1 %vm1474_vm4, %v1630_v11 }
 0x485   : > { %2319 = vmatmul.msk.f32.vlgmr.msra.gmra.mxu3 %vm1474_vm4, %v1684_v10  ;;  %1857 = vmatpush.msrb.mxu1 %v1772_v16  ;;  %v2075_v10 = vpop.permute.xlu2 %2074 }
 0x486   : > { %1837 = vmatpush.msrb.mxu0 %v1771_v15  ;;  %1904 = vmatpush.msra.mxu3 %v1866_v22  ;;  %v1556_v29 = vpop.f32.mrf.mxu2 }
 0x487   : > { %1858 = vmatpush.msrb.mxu1 %v1770_v20 }
 0x488   : > { %1838 = vmatpush.msrb.mxu0 %v1769_v19  ;;  %1905 = vmatpush.msra.mxu3 %v1864_v26 }
 0x489   : > { %2320 = vmatmul.msk.f32.vlgmr.msra.gmra.mxu0 %vm1474_vm4, %v1466_v55 }
 0x48a   : > { %1933 = vmatpush.msra.mxu0 %v1914_v23 }
 0x48b   : > { %v1624_v40 = vpop.permute.xlu0 %1623  ;;  %v1732_v0 = vpop.permute.xlu1 %1731 }
 0x48c   : > { %2321 = vmatmul.msk.f32.vlgmr.msra.gmra.mxu1 %vm1474_vm4, %v1467_v12  ;;  %1934 = vmatpush.msra.mxu0 %v1912_v27 }
 0x48d   : > { %1953 = vmatpush.msra.mxu1 %v1915_v24  ;;  %v2038_v13 = vpop.permute.xlu2 %2037 }
 0x48e   : > { %v1672_v32 = vpop.f32.mrf.mxu2 }
 0x48f   : > { %1954 = vmatpush.msra.mxu1 %v1913_v28 }
 0x493   : > { %v1963_v57 = vpop.permute.xlu1 %1962 }
 0x49b   : > { %v2013_v8 = vpop.permute.xlu1 %2012 }
 0x4a3   : > { %v2069_v21 = vpop.permute.xlu1 %2068 }
 0x4a4   : > { %v2120_v25 = vrot.slane %v2069_v21, 4 }
 0x4f6   : > { %v1534_v30 = vpop.f32.mrf.mxu1 }
 0x4f7   : > { %v1557_v31 = vadd.f32 %v1556_v29, %v1534_v30 }
 0x4fe   : > { %v1617_v34 = vpop.f32.mrf.mxu0 }
 0x500   : > { %v1586_v33 = vpop.f32.mrf.mxu3 }
 0x501   : > { %v1589_v36 = vadd.f32 %v1586_v33, %v1557_v31  ;;  %v1650_v37 = vpop.f32.mrf.mxu1 }
 0x502   : > { %v1673_v39 = vadd.f32 %v1672_v32, %v1650_v37  ;;  %v2174_v32 = vpop.permute.xlu2 %2173 }
 0x503   : > { %v1620_v38 = vadd.f32 %v1617_v34, %v1589_v36 }
 0x504   : > { %v1680_v42 = vadd.f32 %v1678_v35, %v1673_v39  ;;  %v2179_v35 = vrot.slane %v2174_v32, 4 }
 0x505   : > { %v1626_v41 = vadd.f32 %v1624_v40, %v1620_v38 }
 0x506   : > { %v1681_v44 = vmax.f32 %v1680_v42, 0.0  ;;  %v1726_v46 = vpop.f32.mrf.mxu0 }
 0x507   : > { %v1627_v43 = vmax.f32 %v1626_v41, 0.0 }
 0x508   : > { %v1704_v45 = vpop.f32.mrf.mxu3  ;;  %2322 = vmatmul.msk.f32.vlgmr.msrb.gmra.mxu2 %vm1474_vm4, %v1681_v44  ;;  %2323 = vmatmul.msk.f32.vlgmr.msrb.gmra.mxu3 %vm1474_vm4, %v1681_v44 }
 0x509   : > { %v1727_v63 = vadd.f32 %v1726_v46, %v1704_v45  ;;  %2324 = vmatmul.msk.f32.vlgmr.msrb.gmra.mxu0 %vm1474_vm4, %v1627_v43  ;;  %2325 = vmatmul.msk.f32.vlgmr.msrb.gmra.mxu1 %vm1474_vm4, %v1627_v43  ;;  %v1761_v47 = vpop.f32.mrf.mxu1 }
 0x50a   : > { %v1762_v50 = vadd.f32 %v1761_v47, %v1739_v48 }
 0x50b   : > { %v1734_v49 = vadd.f32 %v1732_v0, %v1727_v63 }
 0x50c   : > { %v1764_v52 = vmax.f32 %v1762_v50, 0.0 }
 0x50d   : > { %v1735_v51 = vmax.f32 %v1734_v49, 0.0 }
 0x510   : > { %2326 = vmatmul.msk.f32.vlgmr.msra.gmra.mxu2 %vm1474_vm4, %v1735_v51  ;;  %2327 = vmatmul.msk.f32.vlgmr.msra.gmra.mxu3 %vm1474_vm4, %v1735_v51 }
 0x511   : > { %2328 = vmatmul.msk.f32.vlgmr.msra.gmra.mxu0 %vm1474_vm4, %v1764_v52  ;;  %2329 = vmatmul.msk.f32.vlgmr.msra.gmra.mxu1 %vm1474_vm4, %v1764_v52 }
 0x586   : > { %v1840_v53 = vpop.f32.mrf.mxu0  ;;  %v1860_v55 = vpop.f32.mrf.mxu1 }
 0x58b   : > { %v1797_v56 = vpop.f32.mrf.mxu2  ;;  %v1817_v54 = vpop.f32.mrf.mxu3 }
 0x58c   : > { %v1841_v58 = vadd.f32 %v1840_v53, %v1797_v56  ;;  %v1861_v59 = vadd.f32 %v1860_v55, %v1817_v54 }
 0x58e   : > { %v1936_v2 = vpop.f32.mrf.mxu0  ;;  %v1956_v4 = vpop.f32.mrf.mxu1 }
 0x593   : > { %v1887_v60 = vpop.f32.mrf.mxu2  ;;  %v1907_v61 = vpop.f32.mrf.mxu3 }
 0x594   : > { %v1910_v62 = vadd.f32 %v1887_v60, %v1841_v58  ;;  %v1911_v1 = vadd.f32 %v1907_v61, %v1861_v59 }
 0x596   : > { %v1959_v6 = vadd.f32 %v1936_v2, %v1910_v62  ;;  %v1960_v7 = vadd.f32 %v1956_v4, %v1911_v1 }
 0x598   : > { %2031 = vmatpush.msrb.mxu0 %v1960_v7  ;;  %1965 = vrot.lane.b32.xlu0 %v1959_v6, %s2398_s21 }
 0x599   : > { %2007 = vmatpush.msrb.mxu3 %v1959_v6  ;;  %2332 = vmatmul.msk.f32.vlgmr.msrb.gmra.mxu0 %vm1146_vm3, %v2013_v8 }
 0x59a   : > { %2331 = vmatmul.msk.f32.vlgmr.msrb.gmra.mxu3 %vm1146_vm3, %v3148_v3  ;;  %v2178_v3 = vrot.slane %v1766_v9, 4 }
 0x59b   : > { %2115 = vmatpush.msra.mxu3 %v1959_v6 }
 0x5a0   : > { %2040 = vrot.lane.b32.xlu0 %v1960_v7, %s2398_s21 }
 0x5a2   : > { %2335 = vmatmul.msk.f32.vlgmr.msra.gmra.mxu3 %vm1146_vm3, %v2073_v5 }
 0x5a8   : > { %2125 = vrot.lane.b32.xlu0 %v1766_v9, %s2393_s15  ;;  %s2342_s15 = sshll.u32 %s3311_s26, 4 }
 0x5a9   : > { %s440_s20 = scalar_lea.vmem %s3308_s13, %s2342_s15 }
 0x60a   : > { %v1966_v11 = vpop.permute.xlu0 %1965 }
 0x60b   : > { %1985 = vmatpush.msrb.mxu2 %v1966_v11  ;;  %2144 = vmatpush.msra.mxu0 %v1966_v11 }
 0x60c   : > { %2330 = vmatmul.msk.f32.vlgmr.msrb.gmra.mxu2 %vm1146_vm3, %v1963_v57 }
 0x60d   : > { %2093 = vmatpush.msra.mxu2 %v1960_v7 }
 0x60f   : > { %2198 = vmatpush.msrb.mxu2 %v1959_v6 }
 0x612   : > { %v2041_v12 = vpop.permute.xlu0 %2040 }
 0x613   : > { %2060 = vmatpush.msrb.mxu1 %v2041_v12 }
 0x614   : > { %2333 = vmatmul.msk.f32.vlgmr.msrb.gmra.mxu1 %vm1146_vm3, %v2038_v13  ;;  %2334 = vmatmul.msk.f32.vlgmr.msra.gmra.mxu2 %vm1146_vm3, %v2075_v10 }
 0x615   : > { %2166 = vmatpush.msra.mxu1 %v1959_v6 }
 0x616   : > { %v2033_v15 = vpop.f32.mrf.mxu0 }
 0x61a   : > { %v2126_v5 = vpop.permute.xlu0 %2125 }
 0x61b   : > { %2336 = vmatmul.msk.f32.vlgmr.msra.gmra.mxu0 %vm1146_vm3, %v2126_v5 }
 0x61c   : > { %2337 = vmatmul.msk.f32.vlgmr.msra.gmra.mxu1 %vm1146_vm3, %v1766_v9  ;;  %2338 = vmatmul.msk.f32.vlgmr.msrb.gmra.mxu2 %vm1146_vm3, %v2178_v3 }
 0x61d   : > { %v2009_v14 = vpop.f32.mrf.mxu3 }
 0x625   : > { %v2117_v22 = vpop.f32.mrf.mxu3 }
 0x68f   : > { %v1987_v16 = vpop.f32.mrf.mxu2 }
 0x690   : > { %v2010_v17 = vadd.f32 %v2009_v14, %v1987_v16 }
 0x691   : > { %v2062_v18 = vpop.f32.mrf.mxu1 }
 0x692   : > { %v2036_v19 = vadd.f32 %v2033_v15, %v2010_v17 }
 0x694   : > { %v2065_v20 = vadd.f32 %v2062_v18, %v2036_v19 }
 0x696   : > { %v2071_v23 = vadd.f32 %v2069_v21, %v2065_v20 }
 0x697   : > { %v2095_v24 = vpop.f32.mrf.mxu2 }
 0x698   : > { %v2072_v26 = vmax.f32 %v2071_v23, 0.0  ;;  %v2118_v27 = vadd.f32 %v2117_v22, %v2095_v24  ;;  %v2146_v28 = vpop.f32.mrf.mxu0 }
 0x699   : > { %v2168_v29 = vpop.f32.mrf.mxu1 }
 0x69a   : > { %2205 = vst.msk [vmem:[%s440_s20] sm:$0xf] %vm2204_vm5, %v2072_v26  ;;  %v2122_v30 = vadd.f32 %v2120_v25, %v2118_v27  ;;  %v2169_v31 = vadd.f32 %v2168_v29, %v2146_v28 }
 0x69c   : > { %v2123_v33 = vmax.f32 %v2122_v30, 0.0  ;;  %v2176_v34 = vadd.f32 %v2174_v32, %v2169_v31 }
 0x69e   : > { %2206 = vst.msk [vmem:[%s440_s20 + $0x4] sm:$0xf] %vm2204_vm5, %v2123_v33  ;;  %v2177_v36 = vmax.f32 %v2176_v34, 0.0 }
 0x69f   : > { %v2200_v37 = vpop.f32.mrf.mxu2 }
 0x6a0   : > { %2207 = vst.msk [vmem:[%s440_s20 + $0x8] sm:$0xf] %vm2204_vm5, %v2177_v36  ;;  %v2201_v38 = vadd.f32 %v2200_v37, %v2179_v35 }
 0x6a2   : > { %v2203_v39 = vmax.f32 %v2201_v38, 0.0 }
 0x6a4   : > { %2208 = vst.msk [vmem:[%s440_s20 + $0xc] sm:$0xf] %vm2204_vm5, %v2203_v39 }
 0x6a5 PF: > { %s23_s25 = sadd.s32 1, %s2391_s25  }
 0x6a6   : > { %p20_p4 = scmp.ge.s32.totalorder %s23_s25, 4  }
 0x6a8   :  { %22 = sbr.rel (!%p20_p4) target bundleno = 1 (0x1), region = 102 }

</bundles_post_ra>
